<compile_context>
chip_gen: v5e
topology: v5e:2x2
jax: 0.10.0
libtpu: 0.0.40
codegen_flags: <defaults>
</compile_context>

<pallas_src>
import functools

import jax
import jax.numpy as jnp
from jax import lax
from jax.experimental import pallas as pl
from jax.experimental.pallas import tpu as pltpu


def _round_up(x, m):
    return (x + m - 1) // m * m


def _conv_stats_kernel(xd_ref, w_ref, y_ref, stats_ref, *, t_ho, wo, cin):
    """One (image, Ho-tile) grid cell: in-VMEM im2col -> MXU matmul -> bf16 y tile
    plus per-tile centered BatchNorm partial statistics (sum, M2)."""
    t = pl.program_id(1)
    r0 = t * t_ho                                     # first output row of this tile
    # The 16 conv taps are unit-stride slices of the parity-deinterleaved input:
    # plane p = (kh%2)*2 + (kw%2) holds x_pad[2i + kh%2, 2j + kw%2, :].
    taps = []
    for kh in range(4):
        for kw in range(4):
            plane = (kh % 2) * 2 + (kw % 2)
            tap = xd_ref[plane,
                         pl.ds(r0 + kh // 2, t_ho),
                         pl.ds(kw // 2, wo),
                         :]                            # (t_ho, wo, cin) bf16
            taps.append(tap.astype(jnp.float32))
    rows = t_ho * wo
    # (t_ho, wo, 16*cin) -> (rows, 16*cin).  Built in f32 so the leading-dim merge is
    # tile-aligned whenever wo % 8 == 0; cast back to bf16 for the MXU.
    patches = jnp.concatenate(taps, axis=-1).reshape(rows, 16 * cin)
    acc = jnp.dot(patches.astype(jnp.bfloat16), w_ref[...],
                  preferred_element_type=jnp.float32)  # (rows, Cout_pad) f32
    # Per-tile centered stats (Chan-combinable; every tile has exactly `rows` rows).
    s = jnp.sum(acc, axis=0, keepdims=True)            # (1, Cout_pad)
    mu = s * jnp.float32(1.0 / rows)
    d = acc - mu
    m2 = jnp.sum(d * d, axis=0, keepdims=True)         # (1, Cout_pad)
    y_ref[0] = acc.astype(jnp.bfloat16)
    stats_ref[0, 0] = jnp.concatenate([s, m2], axis=0)  # (2, Cout_pad)


def _bn_nchw_kernel(y_ref, scale_ref, shift_ref, o_ref, *, cout):
    """BatchNorm apply (one FMA/elem) + in-kernel NHWC->NCHW transpose (XLU slot)."""
    z = y_ref[0].astype(jnp.float32)                   # (S_T, Cout_pad)
    z = z * scale_ref[...] + shift_ref[...]
    zt = z.T                                           # (Cout_pad, S_T)
    o_ref[0] = zt[:cout, :]


def downsampling_block(x_nchw, w_oihw, gamma, beta):
    """Forward of DownSamplingBlock: LeakyReLU(0.2) -> conv k4 s2 p1 -> BatchNorm2d."""
    N, Cin, H, W = x_nchw.shape
    Cout, Cin_w, KH, KW = w_oihw.shape
    assert Cin_w == Cin and (KH, KW) == (4, 4)
    stride, pad = 2, 1
    Ho = (H + 2 * pad - KH) // stride + 1
    Wo = (W + 2 * pad - KW) // stride + 1
    HW = Ho * Wo
    K = KH * KW * Cin
    Cp = _round_up(Cout, 128)                          # lane-dense output channels

    # Phase-1 row tile: a divisor of Ho, capped so the in-VMEM patch tile stays small.
    t_ho = Ho
    for d in range(1, Ho + 1):
        if Ho % d == 0 and d * Wo <= 1024 and (d * Wo) % 8 == 0:
            t_ho = d
    grid_t = Ho // t_ho

    # Phase-2 spatial tile: multiple of 128 (lane-dense NCHW store) or the full plane.
    s_t = HW
    if HW > 8192:
        for d in range(128, 8193, 128):
            if HW % d == 0:
                s_t = d
    grid_s = HW // s_t

    # --- glue: NCHW -> NHWC, LeakyReLU(0.2) once per element, zero-pad, parity
    # deinterleave (so the kernel's tap loads are unit-stride), bf16.  One fused XLA
    # pass over x; the 4x im2col patches matrix never exists in HBM. ---------------
    x = jnp.transpose(x_nchw, (0, 2, 3, 1)).astype(jnp.float32)
    x = jnp.where(x >= 0, x, jnp.float32(0.2) * x)
    eh = (H + 2 * pad) % 2
    ew = (W + 2 * pad) % 2
    xp = jnp.pad(x, ((0, 0), (pad, pad + eh), (pad, pad + ew), (0, 0)))
    Hp, Wp = H + 2 * pad + eh, W + 2 * pad + ew
    Hp2, Wp2 = Hp // 2, Wp // 2
    xd = xp.reshape(N, Hp2, 2, Wp2, 2, Cin).transpose(0, 2, 4, 1, 3, 5)
    xd = xd.reshape(N * 4, Hp2, Wp2, Cin).astype(jnp.bfloat16)

    # PyTorch conv weight (Cout, Cin, 4, 4) -> (K, Cout_pad), (kh, kw, cin) column
    # order, zero-padded channels, bf16 for the MXU.
    w_mat = jnp.transpose(w_oihw.astype(jnp.float32), (2, 3, 1, 0)).reshape(K, Cout)
    w_mat = jnp.pad(w_mat, ((0, 0), (0, Cp - Cout))).astype(jnp.bfloat16)

    compiler_params = pltpu.CompilerParams(
        dimension_semantics=("parallel", "parallel"),  # no cross-step accumulation
        vmem_limit_bytes=32 * 1024 * 1024,             # safe on v5e/v6e/v7x
        # (v5e/v6e have 128 MiB physical VMEM: this limit can be raised to 64-96 MiB
        #  and the row-tile cap grown for very large images.)
    )

    # --- phase 1: in-kernel im2col + conv matmul + per-tile centered BN stats ------
    y, stats = pl.pallas_call(
        functools.partial(_conv_stats_kernel, t_ho=t_ho, wo=Wo, cin=Cin),
        out_shape=(
            jax.ShapeDtypeStruct((N, HW, Cp), jnp.bfloat16),
            jax.ShapeDtypeStruct((N, grid_t, 2, Cp), jnp.float32),
        ),
        grid=(N, grid_t),
        in_specs=[
            # Whole deinterleaved padded image per n; the block index is constant
            # across the row-tile axis, so Pallas fetches it once per image.
            pl.BlockSpec((4, Hp2, Wp2, Cin), lambda n, t: (n, 0, 0, 0)),
            pl.BlockSpec((K, Cp), lambda n, t: (0, 0)),        # weight (resident)
        ],
        out_specs=(
            pl.BlockSpec((1, t_ho * Wo, Cp), lambda n, t: (n, t, 0)),   # bf16 y tile
            pl.BlockSpec((1, 1, 2, Cp), lambda n, t: (n, t, 0, 0)),     # partial stats
        ),
        compiler_params=compiler_params,
        cost_estimate=pl.CostEstimate(
            flops=2 * N * HW * K * Cp,
            transcendentals=0,
            bytes_accessed=(4 * N * Hp2 * Wp2 * Cin * 2 + K * Cp * 2
                            + N * HW * Cp * 2 + N * grid_t * 2 * Cp * 4),
        ),
    )(xd, w_mat)

    # --- tiny O(Cout) combine (Chan, equal tile row counts) -> scale / shift -------
    rows = t_ho * Wo
    m_total = N * HW
    sum_t = stats[:, :, 0, :]                           # (N, grid_t, Cp)
    m2_t = stats[:, :, 1, :]
    mean_t = sum_t * jnp.float32(1.0 / rows)
    mean = jnp.sum(sum_t, axis=(0, 1)) * jnp.float32(1.0 / m_total)
    m2 = jnp.sum(m2_t, axis=(0, 1)) + rows * jnp.sum((mean_t - mean) ** 2, axis=(0, 1))
    var = m2 * jnp.float32(1.0 / m_total)               # biased var (BN training mode)
    gamma_p = jnp.pad(gamma.astype(jnp.float32), (0, Cp - Cout))
    beta_p = jnp.pad(beta.astype(jnp.float32), (0, Cp - Cout))
    scale_v = gamma_p * lax.rsqrt(var + jnp.float32(1e-5))
    shift_v = beta_p - mean * scale_v
    scale = scale_v.reshape(1, Cp)
    shift = shift_v.reshape(1, Cp)

    # --- phase 2: y*scale + shift, NHWC->NCHW in-kernel, direct NCHW store ---------
    out_flat = pl.pallas_call(
        functools.partial(_bn_nchw_kernel, cout=Cout),
        out_shape=jax.ShapeDtypeStruct((N, Cout, HW), jnp.float32),
        grid=(N, grid_s),
        in_specs=[
            pl.BlockSpec((1, s_t, Cp), lambda n, s: (n, s, 0)),    # bf16 y tile
            pl.BlockSpec((1, Cp), lambda n, s: (0, 0)),            # scale (resident)
            pl.BlockSpec((1, Cp), lambda n, s: (0, 0)),            # shift (resident)
        ],
        out_specs=pl.BlockSpec((1, Cout, s_t), lambda n, s: (n, 0, s)),
        compiler_params=compiler_params,
        cost_estimate=pl.CostEstimate(
            flops=2 * N * HW * Cp,
            transcendentals=0,
            bytes_accessed=N * HW * Cp * 2 + N * Cout * HW * 4 + 2 * Cp * 4,
        ),
    )(y, scale, shift)

    # Metadata-only reshape: (N, Cout, Ho*Wo) -> (N, Cout, Ho, Wo).
    return out_flat.reshape(N, Cout, Ho, Wo)


def _reference(x_nchw, w_oihw, gamma, beta):
    """Plain-JAX f32 reference: LeakyReLU -> conv -> BatchNorm2d (batch stats)."""
    xr = jnp.where(x_nchw >= 0, x_nchw, 0.2 * x_nchw)
    y = lax.conv_general_dilated(
        xr.astype(jnp.float32),
        w_oihw.astype(jnp.float32),
        window_strides=(2, 2),
        padding=((1, 1), (1, 1)),
        dimension_numbers=("NCHW", "OIHW", "NCHW"),
    )
    mean = jnp.mean(y, axis=(0, 2, 3), keepdims=True)
    var = jnp.mean((y - mean) ** 2, axis=(0, 2, 3), keepdims=True)
    y_hat = (y - mean) * lax.rsqrt(var + 1e-5)
    return y_hat * gamma.reshape(1, -1, 1, 1) + beta.reshape(1, -1, 1, 1)


if __name__ == "__main__":
    # Small shapes consistent with the module: NCHW input, input_nc=4 -> output_nc=8.
    N, Cin, H, W = 2, 4, 16, 16
    Cout, KH, KW = 8, 4, 4

    key = jax.random.PRNGKey(0)
    kx, kw_, kg, kb = jax.random.split(key, 4)
    x = jax.random.normal(kx, (N, Cin, H, W), dtype=jnp.float32)
    # Deterministic synthetic parameters (no checkpoint load).
    w = 0.1 * jax.random.normal(kw_, (Cout, Cin, KH, KW), dtype=jnp.float32)  # conv weight, bias=False
    gamma = 1.0 + 0.1 * jax.random.normal(kg, (Cout,), dtype=jnp.float32)     # BN weight
    beta = 0.1 * jax.random.normal(kb, (Cout,), dtype=jnp.float32)            # BN bias

    fwd = jax.jit(downsampling_block)
    out = jax.block_until_ready(fwd(x, w, gamma, beta))
    ref = jax.block_until_ready(_reference(x, w, gamma, beta))

    assert out.shape == (N, Cout, H // 2, W // 2), out.shape
    # bf16 MXU inputs / bf16 intermediate y with f32 accumulation -> relaxed tolerance
    # (intentional accuracy contract vs the f32 PyTorch conv).
    max_err = float(jnp.max(jnp.abs(out - ref)))
    assert jnp.allclose(out, ref, atol=3e-2, rtol=3e-2), max_err

    print("KERNEL_OK")
</pallas_src>

<mosaic_0001>
module attributes {stable_mosaic.version = 11 : i64} {
  func.func @_conv_stats_kernel(%arg0: i32, %arg1: i32, %arg2: memref<4x9x9x4xbf16, #tpu.memory_space<vmem>>, %arg3: memref<64x128xbf16, #tpu.memory_space<vmem>>, %arg4: memref<1x64x128xbf16, #tpu.memory_space<vmem>>, %arg5: memref<1x1x2x128xf32, #tpu.memory_space<vmem>>) attributes {dimension_semantics = [#tpu.dimension_semantics<parallel>, #tpu.dimension_semantics<parallel>], iteration_bounds = array<i64: 2, 1>, scalar_prefetch = 0 : i64, scratch_operands = 0 : i64, tpu.core_type = #tpu.core_type<tc>, window_params = [{transform_indices = @transform_0, window_bounds = array<i64: 4, 9, 9, 4>}, {pipeline_mode = #tpu.pipeline_mode<synchronous>, transform_indices = @transform_1, window_bounds = array<i64: 64, 128>}, {transform_indices = @transform_2, window_bounds = array<i64: 1, 64, 128>}, {transform_indices = @transform_3, window_bounds = array<i64: 1, 1, 2, 128>}]} {
    %c8_i32 = arith.constant 8 : i32
    %0 = arith.muli %arg1, %c8_i32 : i32
    %c0_i32 = arith.constant 0 : i32
    %1 = arith.addi %0, %c0_i32 : i32
    %c0 = arith.constant 0 : index
    %2 = arith.index_cast %1 : i32 to index
    %c0_0 = arith.constant 0 : index
    %c0_1 = arith.constant 0 : index
    %3 = vector.load %arg2[%c0, %2, %c0_0, %c0_1] : memref<4x9x9x4xbf16, #tpu.memory_space<vmem>>, vector<1x8x8x4xbf16>
    %4 = vector.shape_cast %3 : vector<1x8x8x4xbf16> to vector<8x8x4xbf16>
    %5 = arith.extf %4 : vector<8x8x4xbf16> to vector<8x8x4xf32>
    %c0_i32_2 = arith.constant 0 : i32
    %6 = arith.addi %0, %c0_i32_2 : i32
    %c1 = arith.constant 1 : index
    %7 = arith.index_cast %6 : i32 to index
    %c0_3 = arith.constant 0 : index
    %c0_4 = arith.constant 0 : index
    %8 = vector.load %arg2[%c1, %7, %c0_3, %c0_4] : memref<4x9x9x4xbf16, #tpu.memory_space<vmem>>, vector<1x8x8x4xbf16>
    %9 = vector.shape_cast %8 : vector<1x8x8x4xbf16> to vector<8x8x4xbf16>
    %10 = arith.extf %9 : vector<8x8x4xbf16> to vector<8x8x4xf32>
    %c0_i32_5 = arith.constant 0 : i32
    %11 = arith.addi %0, %c0_i32_5 : i32
    %c0_6 = arith.constant 0 : index
    %12 = arith.index_cast %11 : i32 to index
    %c1_7 = arith.constant 1 : index
    %c0_8 = arith.constant 0 : index
    %13 = vector.load %arg2[%c0_6, %12, %c1_7, %c0_8] : memref<4x9x9x4xbf16, #tpu.memory_space<vmem>>, vector<1x8x8x4xbf16>
    %14 = vector.shape_cast %13 : vector<1x8x8x4xbf16> to vector<8x8x4xbf16>
    %15 = arith.extf %14 : vector<8x8x4xbf16> to vector<8x8x4xf32>
    %c0_i32_9 = arith.constant 0 : i32
    %16 = arith.addi %0, %c0_i32_9 : i32
    %c1_10 = arith.constant 1 : index
    %17 = arith.index_cast %16 : i32 to index
    %c1_11 = arith.constant 1 : index
    %c0_12 = arith.constant 0 : index
    %18 = vector.load %arg2[%c1_10, %17, %c1_11, %c0_12] : memref<4x9x9x4xbf16, #tpu.memory_space<vmem>>, vector<1x8x8x4xbf16>
    %19 = vector.shape_cast %18 : vector<1x8x8x4xbf16> to vector<8x8x4xbf16>
    %20 = arith.extf %19 : vector<8x8x4xbf16> to vector<8x8x4xf32>
    %c0_i32_13 = arith.constant 0 : i32
    %21 = arith.addi %0, %c0_i32_13 : i32
    %c2 = arith.constant 2 : index
    %22 = arith.index_cast %21 : i32 to index
    %c0_14 = arith.constant 0 : index
    %c0_15 = arith.constant 0 : index
    %23 = vector.load %arg2[%c2, %22, %c0_14, %c0_15] : memref<4x9x9x4xbf16, #tpu.memory_space<vmem>>, vector<1x8x8x4xbf16>
    %24 = vector.shape_cast %23 : vector<1x8x8x4xbf16> to vector<8x8x4xbf16>
    %25 = arith.extf %24 : vector<8x8x4xbf16> to vector<8x8x4xf32>
    %c0_i32_16 = arith.constant 0 : i32
    %26 = arith.addi %0, %c0_i32_16 : i32
    %c3 = arith.constant 3 : index
    %27 = arith.index_cast %26 : i32 to index
    %c0_17 = arith.constant 0 : index
    %c0_18 = arith.constant 0 : index
    %28 = vector.load %arg2[%c3, %27, %c0_17, %c0_18] : memref<4x9x9x4xbf16, #tpu.memory_space<vmem>>, vector<1x8x8x4xbf16>
    %29 = vector.shape_cast %28 : vector<1x8x8x4xbf16> to vector<8x8x4xbf16>
    %30 = arith.extf %29 : vector<8x8x4xbf16> to vector<8x8x4xf32>
    %c0_i32_19 = arith.constant 0 : i32
    %31 = arith.addi %0, %c0_i32_19 : i32
    %c2_20 = arith.constant 2 : index
    %32 = arith.index_cast %31 : i32 to index
    %c1_21 = arith.constant 1 : index
    %c0_22 = arith.constant 0 : index
    %33 = vector.load %arg2[%c2_20, %32, %c1_21, %c0_22] : memref<4x9x9x4xbf16, #tpu.memory_space<vmem>>, vector<1x8x8x4xbf16>
    %34 = vector.shape_cast %33 : vector<1x8x8x4xbf16> to vector<8x8x4xbf16>
    %35 = arith.extf %34 : vector<8x8x4xbf16> to vector<8x8x4xf32>
    %c0_i32_23 = arith.constant 0 : i32
    %36 = arith.addi %0, %c0_i32_23 : i32
    %c3_24 = arith.constant 3 : index
    %37 = arith.index_cast %36 : i32 to index
    %c1_25 = arith.constant 1 : index
    %c0_26 = arith.constant 0 : index
    %38 = vector.load %arg2[%c3_24, %37, %c1_25, %c0_26] : memref<4x9x9x4xbf16, #tpu.memory_space<vmem>>, vector<1x8x8x4xbf16>
    %39 = vector.shape_cast %38 : vector<1x8x8x4xbf16> to vector<8x8x4xbf16>
    %40 = arith.extf %39 : vector<8x8x4xbf16> to vector<8x8x4xf32>
    %c1_i32 = arith.constant 1 : i32
    %41 = arith.addi %0, %c1_i32 : i32
    %c0_27 = arith.constant 0 : index
    %42 = arith.index_cast %41 : i32 to index
    %c0_28 = arith.constant 0 : index
    %c0_29 = arith.constant 0 : index
    %43 = vector.load %arg2[%c0_27, %42, %c0_28, %c0_29] : memref<4x9x9x4xbf16, #tpu.memory_space<vmem>>, vector<1x8x8x4xbf16>
    %44 = vector.shape_cast %43 : vector<1x8x8x4xbf16> to vector<8x8x4xbf16>
    %45 = arith.extf %44 : vector<8x8x4xbf16> to vector<8x8x4xf32>
    %c1_i32_30 = arith.constant 1 : i32
    %46 = arith.addi %0, %c1_i32_30 : i32
    %c1_31 = arith.constant 1 : index
    %47 = arith.index_cast %46 : i32 to index
    %c0_32 = arith.constant 0 : index
    %c0_33 = arith.constant 0 : index
    %48 = vector.load %arg2[%c1_31, %47, %c0_32, %c0_33] : memref<4x9x9x4xbf16, #tpu.memory_space<vmem>>, vector<1x8x8x4xbf16>
    %49 = vector.shape_cast %48 : vector<1x8x8x4xbf16> to vector<8x8x4xbf16>
    %50 = arith.extf %49 : vector<8x8x4xbf16> to vector<8x8x4xf32>
    %c1_i32_34 = arith.constant 1 : i32
    %51 = arith.addi %0, %c1_i32_34 : i32
    %c0_35 = arith.constant 0 : index
    %52 = arith.index_cast %51 : i32 to index
    %c1_36 = arith.constant 1 : index
    %c0_37 = arith.constant 0 : index
    %53 = vector.load %arg2[%c0_35, %52, %c1_36, %c0_37] : memref<4x9x9x4xbf16, #tpu.memory_space<vmem>>, vector<1x8x8x4xbf16>
    %54 = vector.shape_cast %53 : vector<1x8x8x4xbf16> to vector<8x8x4xbf16>
    %55 = arith.extf %54 : vector<8x8x4xbf16> to vector<8x8x4xf32>
    %c1_i32_38 = arith.constant 1 : i32
    %56 = arith.addi %0, %c1_i32_38 : i32
    %c1_39 = arith.constant 1 : index
    %57 = arith.index_cast %56 : i32 to index
    %c1_40 = arith.constant 1 : index
    %c0_41 = arith.constant 0 : index
    %58 = vector.load %arg2[%c1_39, %57, %c1_40, %c0_41] : memref<4x9x9x4xbf16, #tpu.memory_space<vmem>>, vector<1x8x8x4xbf16>
    %59 = vector.shape_cast %58 : vector<1x8x8x4xbf16> to vector<8x8x4xbf16>
    %60 = arith.extf %59 : vector<8x8x4xbf16> to vector<8x8x4xf32>
    %c1_i32_42 = arith.constant 1 : i32
    %61 = arith.addi %0, %c1_i32_42 : i32
    %c2_43 = arith.constant 2 : index
    %62 = arith.index_cast %61 : i32 to index
    %c0_44 = arith.constant 0 : index
    %c0_45 = arith.constant 0 : index
    %63 = vector.load %arg2[%c2_43, %62, %c0_44, %c0_45] : memref<4x9x9x4xbf16, #tpu.memory_space<vmem>>, vector<1x8x8x4xbf16>
    %64 = vector.shape_cast %63 : vector<1x8x8x4xbf16> to vector<8x8x4xbf16>
    %65 = arith.extf %64 : vector<8x8x4xbf16> to vector<8x8x4xf32>
    %c1_i32_46 = arith.constant 1 : i32
    %66 = arith.addi %0, %c1_i32_46 : i32
    %c3_47 = arith.constant 3 : index
    %67 = arith.index_cast %66 : i32 to index
    %c0_48 = arith.constant 0 : index
    %c0_49 = arith.constant 0 : index
    %68 = vector.load %arg2[%c3_47, %67, %c0_48, %c0_49] : memref<4x9x9x4xbf16, #tpu.memory_space<vmem>>, vector<1x8x8x4xbf16>
    %69 = vector.shape_cast %68 : vector<1x8x8x4xbf16> to vector<8x8x4xbf16>
    %70 = arith.extf %69 : vector<8x8x4xbf16> to vector<8x8x4xf32>
    %c1_i32_50 = arith.constant 1 : i32
    %71 = arith.addi %0, %c1_i32_50 : i32
    %c2_51 = arith.constant 2 : index
    %72 = arith.index_cast %71 : i32 to index
    %c1_52 = arith.constant 1 : index
    %c0_53 = arith.constant 0 : index
    %73 = vector.load %arg2[%c2_51, %72, %c1_52, %c0_53] : memref<4x9x9x4xbf16, #tpu.memory_space<vmem>>, vector<1x8x8x4xbf16>
    %74 = vector.shape_cast %73 : vector<1x8x8x4xbf16> to vector<8x8x4xbf16>
    %75 = arith.extf %74 : vector<8x8x4xbf16> to vector<8x8x4xf32>
    %c1_i32_54 = arith.constant 1 : i32
    %76 = arith.addi %0, %c1_i32_54 : i32
    %c3_55 = arith.constant 3 : index
    %77 = arith.index_cast %76 : i32 to index
    %c1_56 = arith.constant 1 : index
    %c0_57 = arith.constant 0 : index
    %78 = vector.load %arg2[%c3_55, %77, %c1_56, %c0_57] : memref<4x9x9x4xbf16, #tpu.memory_space<vmem>>, vector<1x8x8x4xbf16>
    %79 = vector.shape_cast %78 : vector<1x8x8x4xbf16> to vector<8x8x4xbf16>
    %80 = arith.extf %79 : vector<8x8x4xbf16> to vector<8x8x4xf32>
    %81 = tpu.concatenate %5, %10, %15, %20, %25, %30, %35, %40, %45, %50, %55, %60, %65, %70, %75, %80 in 2 : vector<8x8x4xf32>, vector<8x8x4xf32>, vector<8x8x4xf32>, vector<8x8x4xf32>, vector<8x8x4xf32>, vector<8x8x4xf32>, vector<8x8x4xf32>, vector<8x8x4xf32>, vector<8x8x4xf32>, vector<8x8x4xf32>, vector<8x8x4xf32>, vector<8x8x4xf32>, vector<8x8x4xf32>, vector<8x8x4xf32>, vector<8x8x4xf32>, vector<8x8x4xf32> -> vector<8x8x64xf32>
    %82 = vector.shape_cast %81 : vector<8x8x64xf32> to vector<64x64xf32>
    %83 = arith.truncf %82 : vector<64x64xf32> to vector<64x64xbf16>
    %c0_58 = arith.constant 0 : index
    %c0_59 = arith.constant 0 : index
    %84 = vector.load %arg3[%c0_58, %c0_59] : memref<64x128xbf16, #tpu.memory_space<vmem>>, vector<64x128xbf16>
    %cst = arith.constant dense<0.000000e+00> : vector<64x128xf32>
    %85 = tpu.matmul %83, %84, %cst {dimension_numbers = #tpu.dot_dimension_numbers<[1], [0], [0], [1], [0, 0, 1, 1], [], []>} : vector<64x64xbf16>, vector<64x128xbf16>, vector<64x128xf32> -> vector<64x128xf32>
    %cst_60 = arith.constant dense<0.000000e+00> : vector<128xf32>
    %86 = vector.multi_reduction <add>, %85, %cst_60 [0] : vector<64x128xf32> to vector<128xf32>
    %87 = vector.shape_cast %86 : vector<128xf32> to vector<1x128xf32>
    %cst_61 = arith.constant 1.562500e-02 : f32
    %88 = vector.broadcast %cst_61 : f32 to vector<1x128xf32>
    %89 = arith.mulf %87, %88 : vector<1x128xf32>
    %90 = vector.broadcast %89 : vector<1x128xf32> to vector<64x128xf32>
    %91 = arith.subf %85, %90 : vector<64x128xf32>
    %92 = arith.mulf %91, %91 : vector<64x128xf32>
    %cst_62 = arith.constant dense<0.000000e+00> : vector<128xf32>
    %93 = vector.multi_reduction <add>, %92, %cst_62 [0] : vector<64x128xf32> to vector<128xf32>
    %94 = vector.shape_cast %93 : vector<128xf32> to vector<1x128xf32>
    %95 = arith.truncf %85 : vector<64x128xf32> to vector<64x128xbf16>
    %c0_63 = arith.constant 0 : index
    %c0_64 = arith.constant 0 : index
    %c0_65 = arith.constant 0 : index
    %96 = vector.load %arg4[%c0_63, %c0_64, %c0_65] : memref<1x64x128xbf16, #tpu.memory_space<vmem>>, vector<1x64x128xbf16>
    %97 = vector.shape_cast %96 : vector<1x64x128xbf16> to vector<64x128xbf16>
    %98 = vector.shape_cast %95 : vector<64x128xbf16> to vector<1x64x128xbf16>
    tpu.vector_store %arg4[%c0_63, %c0_64, %c0_65], %98 {strides = array<i32>} : memref<1x64x128xbf16, #tpu.memory_space<vmem>>, vector<1x64x128xbf16>,
    %99 = tpu.concatenate %87, %94 in 0 : vector<1x128xf32>, vector<1x128xf32> -> vector<2x128xf32>
    %c0_66 = arith.constant 0 : index
    %c0_67 = arith.constant 0 : index
    %c0_68 = arith.constant 0 : index
    %c0_69 = arith.constant 0 : index
    %100 = vector.load %arg5[%c0_66, %c0_67, %c0_68, %c0_69] : memref<1x1x2x128xf32, #tpu.memory_space<vmem>>, vector<1x1x2x128xf32>
    %101 = vector.shape_cast %100 : vector<1x1x2x128xf32> to vector<2x128xf32>
    %102 = vector.shape_cast %99 : vector<2x128xf32> to vector<1x1x2x128xf32>
    tpu.vector_store %arg5[%c0_66, %c0_67, %c0_68, %c0_69], %102 {strides = array<i32>} : memref<1x1x2x128xf32, #tpu.memory_space<vmem>>, vector<1x1x2x128xf32>,
    return
  }
  func.func @transform_0(%arg0: i32, %arg1: i32) -> (i32, i32, i32, i32) {
    %c0_i32 = arith.constant 0 : i32
    %c0_i32_0 = arith.constant 0 : i32
    %c0_i32_1 = arith.constant 0 : i32
    %c0_i32_2 = arith.constant 0 : i32
    return %arg0, %c0_i32, %c0_i32_0, %c0_i32_1 : i32, i32, i32, i32
  }
  func.func @transform_1(%arg0: i32, %arg1: i32) -> (i32, i32) {
    %c0_i32 = arith.constant 0 : i32
    %c0_i32_0 = arith.constant 0 : i32
    %c0_i32_1 = arith.constant 0 : i32
    return %c0_i32, %c0_i32_0 : i32, i32
  }
  func.func @transform_2(%arg0: i32, %arg1: i32) -> (i32, i32, i32) {
    %c0_i32 = arith.constant 0 : i32
    %c0_i32_0 = arith.constant 0 : i32
    return %arg0, %arg1, %c0_i32 : i32, i32, i32
  }
  func.func @transform_3(%arg0: i32, %arg1: i32) -> (i32, i32, i32, i32) {
    %c0_i32 = arith.constant 0 : i32
    %c0_i32_0 = arith.constant 0 : i32
    %c0_i32_1 = arith.constant 0 : i32
    return %arg0, %arg1, %c0_i32, %c0_i32_0 : i32, i32, i32, i32
  }
}

module attributes {stable_mosaic.version = 11 : i64} {
  func.func @_bn_nchw_kernel(%arg0: i32, %arg1: i32, %arg2: memref<1x64x128xbf16, #tpu.memory_space<vmem>>, %arg3: memref<1x128xf32, #tpu.memory_space<vmem>>, %arg4: memref<1x128xf32, #tpu.memory_space<vmem>>, %arg5: memref<1x8x64xf32, #tpu.memory_space<vmem>>) attributes {dimension_semantics = [#tpu.dimension_semantics<parallel>, #tpu.dimension_semantics<parallel>], iteration_bounds = array<i64: 2, 1>, scalar_prefetch = 0 : i64, scratch_operands = 0 : i64, tpu.core_type = #tpu.core_type<tc>, window_params = [{transform_indices = @transform_0, window_bounds = array<i64: 1, 64, 128>}, {pipeline_mode = #tpu.pipeline_mode<synchronous>, transform_indices = @transform_1, window_bounds = array<i64: 1, 128>}, {pipeline_mode = #tpu.pipeline_mode<synchronous>, transform_indices = @transform_2, window_bounds = array<i64: 1, 128>}, {transform_indices = @transform_3, window_bounds = array<i64: 1, 8, 64>}]} {
    %c0 = arith.constant 0 : index
    %c0_0 = arith.constant 0 : index
    %c0_1 = arith.constant 0 : index
    %0 = vector.load %arg2[%c0, %c0_0, %c0_1] : memref<1x64x128xbf16, #tpu.memory_space<vmem>>, vector<1x64x128xbf16>
    %1 = vector.shape_cast %0 : vector<1x64x128xbf16> to vector<64x128xbf16>
    %2 = arith.extf %1 : vector<64x128xbf16> to vector<64x128xf32>
    %c0_2 = arith.constant 0 : index
    %c0_3 = arith.constant 0 : index
    %3 = vector.load %arg3[%c0_2, %c0_3] : memref<1x128xf32, #tpu.memory_space<vmem>>, vector<1x128xf32>
    %4 = vector.broadcast %3 : vector<1x128xf32> to vector<64x128xf32>
    %5 = arith.mulf %2, %4 : vector<64x128xf32>
    %c0_4 = arith.constant 0 : index
    %c0_5 = arith.constant 0 : index
    %6 = vector.load %arg4[%c0_4, %c0_5] : memref<1x128xf32, #tpu.memory_space<vmem>>, vector<1x128xf32>
    %7 = vector.broadcast %6 : vector<1x128xf32> to vector<64x128xf32>
    %8 = arith.addf %5, %7 : vector<64x128xf32>
    %9 = tpu.transpose %8, [1, 0] : vector<64x128xf32> -> vector<128x64xf32>
    %10 = vector.extract_strided_slice %9 {offsets = [0, 0], sizes = [8, 64], strides = [1, 1]} : vector<128x64xf32> to vector<8x64xf32>
    %c0_6 = arith.constant 0 : index
    %c0_7 = arith.constant 0 : index
    %c0_8 = arith.constant 0 : index
    %11 = vector.load %arg5[%c0_6, %c0_7, %c0_8] : memref<1x8x64xf32, #tpu.memory_space<vmem>>, vector<1x8x64xf32>
    %12 = vector.shape_cast %11 : vector<1x8x64xf32> to vector<8x64xf32>
    %13 = vector.shape_cast %10 : vector<8x64xf32> to vector<1x8x64xf32>
    tpu.vector_store %arg5[%c0_6, %c0_7, %c0_8], %13 {strides = array<i32>} : memref<1x8x64xf32, #tpu.memory_space<vmem>>, vector<1x8x64xf32>,
    return
  }
  func.func @transform_0(%arg0: i32, %arg1: i32) -> (i32, i32, i32) {
    %c0_i32 = arith.constant 0 : i32
    %c0_i32_0 = arith.constant 0 : i32
    return %arg0, %arg1, %c0_i32 : i32, i32, i32
  }
  func.func @transform_1(%arg0: i32, %arg1: i32) -> (i32, i32) {
    %c0_i32 = arith.constant 0 : i32
    %c0_i32_0 = arith.constant 0 : i32
    %c0_i32_1 = arith.constant 0 : i32
    return %c0_i32, %c0_i32_0 : i32, i32
  }
  func.func @transform_2(%arg0: i32, %arg1: i32) -> (i32, i32) {
    %c0_i32 = arith.constant 0 : i32
    %c0_i32_0 = arith.constant 0 : i32
    %c0_i32_1 = arith.constant 0 : i32
    return %c0_i32, %c0_i32_0 : i32, i32
  }
  func.func @transform_3(%arg0: i32, %arg1: i32) -> (i32, i32, i32) {
    %c0_i32 = arith.constant 0 : i32
    %c0_i32_0 = arith.constant 0 : i32
    return %arg0, %c0_i32, %arg1 : i32, i32, i32
  }
}

</mosaic_0001>

<bundles_post_ra>
// kernel: downsampling_block.3
= control target key start
LH: loop header
LB: loop body
LE: loop exit
PB: predicated region body
PF: predicated region fallthrough
CT: control target
= control target key end

     0   :  { %s457_s12 = smov 0   ;;  %s459_s13 = smov 0   ;;  %s500_s0 = inlined_call_operand.vmem [shape: bf16[2,64,128], index: 0, kind: input, shape index: {}]   ;;  %s501_s1 = inlined_call_operand.vmem [shape: f32[1,128], index: 1, kind: input, shape index: {}]   ;;  %s502_s2 = inlined_call_operand.vmem [shape: f32[1,128], index: 2, kind: input, shape index: {}]   ;;  %s503_s3 = inlined_call_operand.vmem [shape: f32[2,8,64], index: 3, kind: output, shape index: {}]  }
   0x1   :  { %s461_s14 = smov 0  }
   0x2 LB: > { %s25_s15 = sadd.s32 1, %s431_s13  ;;  %p360_p0 = scmp.ge.s32.totalorder %s435_s14, 1  ;;  %s435_s14 = sphi %s461_s14, %s13_s14   ;;  %s431_s13 = sphi %s459_s13, %s505_s13   ;;  %s427_s12 = sphi %s457_s12, %s504_s12  }
   0x3   : > { %p27_p1 = scmp.ge.s32.totalorder %s25_s15, 2  ;;  %p158_p2 = scmp.lt.s32.totalorder %s435_s14, 3 }
   0x5   : > { %s507_s15 = smov (%p27_p1, %s25_s15), 0  ;;  %p159_p3 = pnand %p360_p0, %p158_p2 }
   0x6   : > { %p189_p4 = scmp.lt.s32.totalorder (!%p159_p3), %s427_s12, 1 }
   0x7   : > { %162 = sbr.rel (%p159_p3) target bundleno = 188 (0xbc), region = 32 }
   0xc   : > { %s509_s12 = smov (!%p189_p4, %s427_s12), 1  ;;  %v411_v0 = vld [vmem:[%s501_s1] ss:$0 sm:$0xff]  ;;  %vm277_vm0 = vcmask 523264  }
   0xd   : > { %s366_s16 = sshll.u32 %s509_s12, 5  ;;  %v412_v3 = vld [vmem:[%s502_s2] ss:$0 sm:$0xff]  ;;  %s363_s24 = sshll.u32 %s509_s12, 3 }
   0xe   : > { %s196_s19 = scalar_lea.vmem %s500_s0, %s366_s16  ;;  %s204_s27 = scalar_lea.vmem %s503_s3, %s363_s24 }
   0xf   : > { %v368_v1 = vld [vmem:[%s196_s19] sm:$0xff]   ;;  %v383_v8 = vld [vmem:[%s196_s19 + $0x8] sm:$0xff]   ;;  %v384_v15 = vld [vmem:[%s196_s19 + $0x10] sm:$0xff]  }
  0x10   : > { %v369_v2 = vunpack.c.l.bf16 %v368_v1  ;;  %v370_v5 = vunpack.c.h.bf16 %v368_v1  ;;  %v373_v10 = vunpack.c.l.bf16 %v383_v8  ;;  %v374_v13 = vunpack.c.h.bf16 %v383_v8  ;;  %v385_v22 = vld [vmem:[%s196_s19 + $0x18] sm:$0xff]  }
  0x11   : > { %v377_v17 = vunpack.c.l.bf16 %v384_v15  ;;  %v378_v20 = vunpack.c.h.bf16 %v384_v15  ;;  %v381_v24 = vunpack.c.l.bf16 %v385_v22  ;;  %v382_v27 = vunpack.c.h.bf16 %v385_v22 }
  0x12   : > { %v225_v4 = vmul.f32 %v411_v0, %v369_v2  ;;  %v226_v7 = vmul.f32 %v411_v0, %v370_v5  ;;  %v227_v11 = vmul.f32 %v411_v0, %v373_v10  ;;  %v228_v14 = vmul.f32 %v411_v0, %v374_v13 }
  0x13   : > { %v229_v18 = vmul.f32 %v411_v0, %v377_v17  ;;  %v230_v21 = vmul.f32 %v411_v0, %v378_v20  ;;  %v231_v25 = vmul.f32 %v411_v0, %v381_v24  ;;  %v232_v28 = vmul.f32 %v411_v0, %v382_v27 }
  0x14   : > { %v237_v6 = vadd.f32 %v412_v3, %v225_v4  ;;  %v238_v9 = vadd.f32 %v412_v3, %v226_v7  ;;  %v239_v12 = vadd.f32 %v412_v3, %v227_v11  ;;  %v240_v16 = vadd.f32 %v412_v3, %v228_v14 }
  0x15   : > { %v241_v19 = vadd.f32 %v412_v3, %v229_v18  ;;  %v242_v23 = vadd.f32 %v412_v3, %v230_v21  ;;  %v243_v26 = vadd.f32 %v412_v3, %v231_v25  ;;  %v244_v29 = vadd.f32 %v412_v3, %v232_v28 }
  0x16   : > { %245 = vxpose.xlu0.b32.start [1/8] (short) (narrow) %v237_v6, 8 }
  0x1e   : > { %246 = vxpose.xlu0.b32.cont [2/8] (short) (narrow) %v238_v9, 8 }
  0x26   : > { %247 = vxpose.xlu0.b32.cont [3/8] (short) (narrow) %v239_v12, 8 }
  0x2e   : > { %248 = vxpose.xlu0.b32.cont [4/8] (short) (narrow) %v240_v16, 8 }
  0x36   : > { %249 = vxpose.xlu0.b32.cont [5/8] (short) (narrow) %v241_v19, 8 }
  0x3e   : > { %250 = vxpose.xlu0.b32.cont [6/8] (short) (narrow) %v242_v23, 8 }
  0x46   : > { %251 = vxpose.xlu0.b32.cont [7/8] (short) (narrow) %v243_v26, 8 }
  0x4e   : > { %252 = vxpose.xlu0.b32.end [8/8] (short) (narrow) %v244_v29, 8 }
  0xba   : > { %v261_v30 = vpop.trf.xlu0 }
  0xbb   : > { %278 = vst.msk [vmem:[%s204_s27] sm:$0xff] %vm277_vm0, %v261_v30 }
  0xbc PF: > { %s13_s14 = sadd.s32 1, %s435_s14   ;;  %s504_s12 = smov %s431_s13 }
  0xbd   : > { %p10_p5 = scmp.ge.s32.totalorder %s13_s14, 4   ;;  %s505_s13 = smov %s507_s15 }
  0xbf   :  { %12 = sbr.rel (!%p10_p5) target bundleno = 2 (0x2), region = 62 }

// kernel: downsampling_block.2
= control target key start
LH: loop header
LB: loop body
LE: loop exit
PB: predicated region body
PF: predicated region fallthrough
CT: control target
= control target key end

     0   :  { %s2195_s12 = smov 0   ;;  %s2197_s13 = smov 0   ;;  %s2959_s0 = inlined_call_operand.vmem [shape: bf16[8,9,9,4], index: 0, kind: input, shape index: {}]   ;;  %s2960_s1 = inlined_call_operand.vmem [shape: bf16[64,128], index: 1, kind: input, shape index: {}]   ;;  %s2961_s2 = inlined_call_operand.vmem [shape: bf16[2,64,128], index: 2, kind: output, shape index: {0}]   ;;  %s2962_s3 = inlined_call_operand.vmem [shape: f32[2,1,2,128], index: 3, kind: output, shape index: {1}]  }
   0x1   :  { %s2199_s14 = smov 0  }
   0x2 LB: > { %s26_s15 = sadd.s32 1, %s2154_s13  ;;  %p1616_p0 = scmp.ge.s32.totalorder %s2158_s14, 1  ;;  %s2158_s14 = sphi %s2199_s14, %s14_s14   ;;  %s2154_s13 = sphi %s2197_s13, %s2964_s13   ;;  %s2150_s12 = sphi %s2195_s12, %s2963_s12  }
   0x3   : > { %p28_p1 = scmp.ge.s32.totalorder %s26_s15, 2  ;;  %p158_p2 = scmp.lt.s32.totalorder %s2158_s14, 3 }
   0x5   : > { %s2966_s15 = smov (%p28_p1, %s26_s15), 0  ;;  %p159_p3 = pnand %p1616_p0, %p158_p2 }
   0x6   : > { %s1617_s16 = sshll.u32 (!%p159_p3), %s2150_s12, 2  ;;  %s2160_s21 = smov (!%p159_p3), 4  }
   0x7   : > { %162 = sbr.rel (%p159_p3) target bundleno = 484 (0x1e4), region = 28  ;;  %p195_p4 = scmp.lt.s32.totalorder (!%p159_p3), %s1617_s16, 7 }
   0x8   : > { %s2161_s22 = smov (!%p159_p3), 8   ;;  %s2162_s23 = smov (!%p159_p3), 12  }
   0x9   : > { %s2163_s24 = smov (!%p159_p3), 16   ;;  %s2164_s25 = smov (!%p159_p3), 20  }
   0xa   : > { %s2165_s26 = smov (!%p159_p3), 24   ;;  %s2166_s27 = smov (!%p159_p3), 28  }
   0xb   : > { %s2167_s28 = smov (!%p159_p3), 32   ;;  %s2168_s29 = smov (!%p159_p3), 36  }
   0xc   : > { %s2968_s16 = smov (!%p195_p4, %s1617_s16), 7  ;;  %vm549_vm0 = vcmask 1046528   ;;  %s2169_s30 = smov 40   ;;  %vm1182_vm1 = vcmask 31744   ;;  %vm1191_vm2 = vcmask 64512   ;;  %vm1200_vm3 = vcmask 97280  }
   0xd   : > { %s1796_s17 = smul.u32 72, %s2968_s16  ;;  %s2170_s4 = smov 44   ;;  %vm1209_vm4 = vcmask 130048   ;;  %vm1218_vm5 = vcmask 162816   ;;  %vm1227_vm6 = vcmask 195584   ;;  %vm1236_vm7 = vcmask 228352  }
   0xe   : > { %s2171_s5 = smov 48   ;;  %s2172_s6 = smov 52   ;;  %vm1245_vm8 = vcmask 261120   ;;  %vm1254_vm9 = vcmask 293888   ;;  %vm1263_vm10 = vcmask 326656   ;;  %vm1272_vm11 = vcmask 359424  }
   0xf   : > { %s2219_s20 = scalar_lea.vmem %s2959_s0, %s1796_s17  ;;  %s2173_s7 = smov 56   ;;  %vm1281_vm12 = vcmask 392192   ;;  %vm1290_vm13 = vcmask 424960   ;;  %vm1299_vm14 = vcmask 457728   ;;  %vm1308_vm15 = vcmask 490496  }
  0x10   : > { %v1626_v0 = vld [vmem:[%s2219_s20 + $0x68] sm:$0xf]  ;;  %v1627_v1 = vld [vmem:[%s2219_s20 + $0x70] sm:$0xf]  ;;  %v2226_v7 = vld [vmem:[%s2219_s20] sm:$0xf] }
  0x11   : > { %v1622_v2 = vld [vmem:[%s2219_s20 + $0x48] sm:$0xf]  ;;  %v254_v3 = vunpack.c.l.bf16 %v1626_v0  ;;  %v255_v4 = vunpack.c.l.bf16 %v1627_v1  ;;  %v1623_v5 = vld [vmem:[%s2219_s20 + $0x50] sm:$0xf]  ;;  %v231_v10 = vunpack.c.l.bf16 %v2226_v7  ;;  %v258_v12 = vld [vmem:[%s2219_s20 + $0x4] sm:$0x1] }
  0x12   : > { %v250_v6 = vunpack.c.l.bf16 %v1622_v2  ;;  %v2229_v8 = vld [vmem:[%s2219_s20 + $0x8] sm:$0xf]  ;;  %v251_v9 = vunpack.c.l.bf16 %v1623_v5  ;;  %v259_v13 = vld [vmem:[%s2219_s20 + $0xc] sm:$0x1]  ;;  %v2236_v14 = vld [vmem:[%s2219_s20 + $0x78] sm:$0xf]  ;;  %v266_v22 = vunpack.c.l.bf16 %v258_v12 }
  0x13   : > { %v232_v11 = vunpack.c.l.bf16 %v2229_v8  ;;  %v2238_v15 = vrot.slane %v255_v4, 1  ;;  %v1846_v16 = vpack.i.bf16 %v255_v4, %v254_v3  ;;  %v2240_v17 = vrot.slane %v254_v3, 1  ;;  %v2245_v19 = vld [vmem:[%s2219_s20 + $0x80] sm:$0xf]  ;;  %v1624_v24 = vld [vmem:[%s2219_s20 + $0x58] sm:$0xf] }
  0x14   : > { %v2242_v18 = vrot.slane %v250_v6, 1  ;;  %v2247_v20 = vrot.slane %v251_v9, 1  ;;  %v1836_v21 = vpack.i.bf16 %v251_v9, %v250_v6  ;;  %v267_v23 = vunpack.c.l.bf16 %v259_v13  ;;  %v1625_v25 = vld [vmem:[%s2219_s20 + $0x60] sm:$0xf]  ;;  %v2259_v30 = vld [vmem:[%s2219_s20 + $0x10] sm:$0xf] }
  0x15   : > { %1847 = vrot.lane.b32.xlu1 %v1846_v16, %s2160_s21  ;;  %v550_v26 = vrot.slane %v231_v10, 1  ;;  %v553_v27 = vrot.slane %v232_v11, 1  ;;  %v256_v28 = vunpack.c.l.bf16 %v2236_v14  ;;  %v257_v29 = vunpack.c.l.bf16 %v2245_v19  ;;  %v2263_v35 = vld [vmem:[%s2219_s20 + $0x18] sm:$0xf]  ;;  %v260_v36 = vld [vmem:[%s2219_s20 + $0x14] sm:$0x1] }
  0x16   : > { %1837 = vrot.lane.b32.xlu0 %v1836_v21, %s2160_s21  ;;  %v551_v31 = vrot.slane %v266_v22, 1  ;;  %v554_v32 = vrot.slane %v267_v23, 1  ;;  %v252_v33 = vunpack.c.l.bf16 %v1624_v24  ;;  %v253_v34 = vunpack.c.l.bf16 %v1625_v25  ;;  %v261_v39 = vld [vmem:[%s2219_s20 + $0x1c] sm:$0x1]  ;;  %v2273_v40 = vld [vmem:[%s2219_s20 + $0x30] sm:$0xf] }
  0x17   : > { %v1851_v37 = vpack.i.bf16 %v257_v29, %v256_v28  ;;  %v233_v38 = vunpack.c.l.bf16 %v2259_v30  ;;  %v2276_v41 = vld [vmem:[%s2219_s20 + $0x38] sm:$0xf]  ;;  %v264_v46 = vld [vmem:[%s2219_s20 + $0x34] sm:$0x1]  ;;  %v265_v47 = vld [vmem:[%s2219_s20 + $0x3c] sm:$0x1]  ;;  %v234_v50 = vunpack.c.l.bf16 %v2263_v35  ;;  %v268_v51 = vunpack.c.l.bf16 %v260_v36 }
  0x18   : > { %v552_v42 = vsel %vm549_vm0, %v550_v26, %v551_v31  ;;  %v555_v43 = vsel %vm549_vm0, %v553_v27, %v554_v32  ;;  %v2280_v44 = vrot.slane %v253_v34, 1  ;;  %v1841_v45 = vpack.i.bf16 %v253_v34, %v252_v33  ;;  %v2288_v52 = vld [vmem:[%s2219_s20 + $0x20] sm:$0xf]  ;;  %v2295_v57 = vld [vmem:[%s2219_s20 + $0x28] sm:$0xf]  ;;  %s2174_s8 = smov 60  }
  0x19   : > { %v1856_v48 = vpack.i.bf16 %v555_v43, %v552_v42  ;;  %v2284_v49 = vrot.slane %v252_v33, 1  ;;  %v269_v53 = vunpack.c.l.bf16 %v261_v39  ;;  %v556_v54 = vrot.slane %v233_v38, 1  ;;  %v262_v62 = vld [vmem:[%s2219_s20 + $0x24] sm:$0x1]  ;;  %v263_v63 = vld [vmem:[%s2219_s20 + $0x2c] sm:$0x1] }
  0x1a   : > { %v237_v55 = vunpack.c.l.bf16 %v2273_v40  ;;  %v238_v56 = vunpack.c.l.bf16 %v2276_v41  ;;  %v557_v58 = vrot.slane %v268_v51, 1  ;;  %v559_v59 = vrot.slane %v234_v50, 1  ;;  %v1630_v4 = vld [vmem:[%s2219_s20 + $0x4c] sm:$0x1]  ;;  %v1631_v13 = vld [vmem:[%s2219_s20 + $0x54] sm:$0x1] }
  0x1b   : > { %1857 = vrot.lane.b32.xlu2 %v1856_v48, %s2161_s22  ;;  %v272_v60 = vunpack.c.l.bf16 %v264_v46  ;;  %v273_v61 = vunpack.c.l.bf16 %v265_v47  ;;  %v560_v0 = vrot.slane %v269_v53, 1  ;;  %v235_v3 = vunpack.c.l.bf16 %v2288_v52  ;;  %v1634_v16 = vld [vmem:[%s2219_s20 + $0x6c] sm:$0x1]  ;;  %v1635_v25 = vld [vmem:[%s2219_s20 + $0x74] sm:$0x1]  ;;  %p202_p5 = scmp.lt.s32.totalorder %s2150_s12, 1 }
  0x1c   : > { %v568_v1 = vrot.slane %v237_v55, 1  ;;  %v571_v2 = vrot.slane %v238_v56, 1  ;;  %v558_v5 = vsel %vm549_vm0, %v556_v54, %v557_v58  ;;  %v236_v12 = vunpack.c.l.bf16 %v2295_v57  ;;  %v1632_v26 = vld [vmem:[%s2219_s20 + $0x5c] sm:$0x1]  ;;  %v1633_v34 = vld [vmem:[%s2219_s20 + $0x64] sm:$0x1] }
  0x1d   : > { %1852 = vrot.lane.b32.xlu1 %v1851_v37, %s2160_s21  ;;  %v569_v6 = vrot.slane %v272_v60, 1  ;;  %v572_v9 = vrot.slane %v273_v61, 1  ;;  %v561_v21 = vsel %vm549_vm0, %v559_v59, %v560_v0  ;;  %v270_v22 = vunpack.c.l.bf16 %v262_v62  ;;  %v1636_v48 = vld [vmem:[%s2219_s20 + $0x7c] sm:$0x1]  ;;  %v1637_v59 = vld [vmem:[%s2219_s20 + $0x84] sm:$0x1] }
  0x1e   : > { %1842 = vrot.lane.b32.xlu0 %v1841_v45, %s2160_s21  ;;  %v271_v23 = vunpack.c.l.bf16 %v263_v63  ;;  %v562_v24 = vrot.slane %v235_v3, 1  ;;  %v1861_v27 = vpack.i.bf16 %v561_v21, %v558_v5  ;;  %v565_v33 = vrot.slane %v236_v12, 1  ;;  %v1639_v19 = vld [vmem:[%s2219_s20 + $0x98] sm:$0xf]  ;;  %v1729_v41 = vld [vmem:[%s2219_s20 + $0xfc] sm:$0x1] }
  0x1f   : > { %v570_v31 = vsel %vm549_vm0, %v568_v1, %v569_v6  ;;  %v573_v32 = vsel %vm549_vm0, %v571_v2, %v572_v9  ;;  %v563_v37 = vrot.slane %v270_v22, 1  ;;  %v282_v42 = vunpack.c.l.bf16 %v1630_v4  ;;  %s2970_s12 = smov (!%p202_p5, %s2150_s12), 1 }
  0x20   : > { %v1871_v36 = vpack.i.bf16 %v573_v32, %v570_v31  ;;  %v566_v39 = vrot.slane %v271_v23, 1  ;;  %v283_v43 = vunpack.c.l.bf16 %v1631_v13  ;;  %v286_v45 = vunpack.c.l.bf16 %v1634_v16  ;;  %s1756_s21 = sshll.u32 %s2970_s12, 5 }
  0x21   : > { %v287_v46 = vunpack.c.l.bf16 %v1635_v25  ;;  %v284_v47 = vunpack.c.l.bf16 %v1632_v26  ;;  %v564_v51 = vsel %vm549_vm0, %v562_v24, %v563_v37  ;;  %v607_v54 = vrot.slane %v282_v42, 1  ;;  %v2348_v26 = vld [vmem:[%s2219_s20 + $0xa0] sm:$0xf] }
  0x22   : > { %v567_v53 = vsel %vm549_vm0, %v565_v33, %v566_v39  ;;  %v285_v58 = vunpack.c.l.bf16 %v1633_v34  ;;  %v610_v61 = vrot.slane %v283_v43, 1  ;;  %v619_v62 = vrot.slane %v286_v45, 1  ;;  %v1642_v33 = vld [vmem:[%s2219_s20 + $0xb0] sm:$0xf]  ;;  %v1643_v34 = vld [vmem:[%s2219_s20 + $0xb8] sm:$0xf] }
  0x23   : > { %1862 = vrot.lane.b32.xlu2 %v1861_v27, %s2161_s22  ;;  %v1866_v60 = vpack.i.bf16 %v567_v53, %v564_v51  ;;  %v622_v63 = vrot.slane %v287_v46, 1  ;;  %v608_v0 = vsel %vm549_vm0, %v2242_v18, %v607_v54  ;;  %v613_v1 = vrot.slane %v284_v47, 1  ;;  %v1646_v39 = vld [vmem:[%s2219_s20 + $0xd8] sm:$0xf]  ;;  %v1647_v42 = vld [vmem:[%s2219_s20 + $0xe0] sm:$0xf] }
  0x24   : > { %v616_v2 = vrot.slane %v285_v58, 1  ;;  %v288_v4 = vunpack.c.l.bf16 %v1636_v48  ;;  %v611_v5 = vsel %vm549_vm0, %v2247_v20, %v610_v61  ;;  %v289_v6 = vunpack.c.l.bf16 %v1637_v59  ;;  %v2368_v46 = vld [vmem:[%s2219_s20 + $0xc0] sm:$0xf]  ;;  %v2371_v47 = vld [vmem:[%s2219_s20 + $0xc8] sm:$0xf] }
  0x25   : > { %1872 = vrot.lane.b32.xlu1 %v1871_v36, %s2161_s22  ;;  %v620_v9 = vsel %vm549_vm0, %v2240_v17, %v619_v62  ;;  %v623_v18 = vsel %vm549_vm0, %v2238_v15, %v622_v63  ;;  %v1876_v13 = vpack.i.bf16 %v611_v5, %v608_v0  ;;  %v614_v16 = vsel %vm549_vm0, %v2284_v49, %v613_v1  ;;  %v2351_v15 = vld [vmem:[%s2219_s20 + $0xa8] sm:$0xf]  ;;  %v2381_v59 = vld [vmem:[%s2219_s20 + $0xf0] sm:$0xf]  ;;  %v1654_v61 = vld [vmem:[%s2219_s20 + $0x94] sm:$0x1] }
  0x26   : > { %1867 = vrot.lane.b32.xlu0 %v1866_v60, %s2161_s22  ;;  %v617_v21 = vsel %vm549_vm0, %v2280_v44, %v616_v2  ;;  %v627_v20 = vrot.slane %v257_v29, 1  ;;  %v624_v22 = vrot.slane %v256_v28, 1  ;;  %v625_v23 = vrot.slane %v288_v4, 1  ;;  %v1638_v44 = vld [vmem:[%s2219_s20 + $0x90] sm:$0xf] }
  0x27   : > { %v628_v24 = vrot.slane %v289_v6, 1  ;;  %v1886_v17 = vpack.i.bf16 %v623_v18, %v620_v9  ;;  %v1881_v25 = vpack.i.bf16 %v617_v21, %v614_v16  ;;  %v303_v28 = vunpack.c.l.bf16 %v2348_v26  ;;  %v2378_v58 = vld [vmem:[%s2219_s20 + $0xe8] sm:$0xf]  ;;  %v1655_v62 = vld [vmem:[%s2219_s20 + $0x9c] sm:$0x1] }
  0x28   : > { %v626_v29 = vsel %vm549_vm0, %v624_v22, %v625_v23  ;;  %v304_v49 = vunpack.c.l.bf16 %v2351_v15  ;;  %v301_v27 = vunpack.c.l.bf16 %v1638_v44  ;;  %v302_v31 = vunpack.c.l.bf16 %v1639_v19  ;;  %v2392_v4 = vld [vmem:[%s2219_s20 + $0x108] sm:$0xf]  ;;  %v2395_v5 = vld [vmem:[%s2219_s20 + $0x110] sm:$0xf]  ;;  %v1650_v6 = vld [vmem:[%s2219_s20 + $0xf8] sm:$0xf] }
  0x29   : > { %v629_v14 = vsel %vm549_vm0, %v627_v20, %v628_v24  ;;  %v305_v43 = vunpack.c.l.bf16 %v1642_v33  ;;  %v306_v45 = vunpack.c.l.bf16 %v1643_v34  ;;  %v320_v48 = vunpack.c.l.bf16 %v1646_v39  ;;  %v1651_v9 = vld [vmem:[%s2219_s20 + $0x100] sm:$0xf]  ;;  %v1658_v16 = vld [vmem:[%s2219_s20 + $0xb4] sm:$0x1]  ;;  %v1659_v21 = vld [vmem:[%s2219_s20 + $0xbc] sm:$0x1] }
  0x2a   : > { %v1891_v32 = vpack.i.bf16 %v629_v14, %v626_v29  ;;  %v1901_v36 = vpack.i.bf16 %v304_v49, %v303_v28  ;;  %v1896_v37 = vpack.i.bf16 %v302_v31, %v301_v27  ;;  %v321_v51 = vunpack.c.l.bf16 %v1647_v42  ;;  %v1662_v22 = vld [vmem:[%s2219_s20 + $0xdc] sm:$0x1]  ;;  %v1663_v23 = vld [vmem:[%s2219_s20 + $0xe4] sm:$0x1]  ;;  %v1694_v15 = vld [vmem:[%s2219_s20 + $0x54] sm:$0x1] }
  0x2b   : > { %1877 = vrot.lane.b32.xlu2 %v1876_v13, %s2162_s23  ;;  %v307_v53 = vunpack.c.l.bf16 %v2368_v46  ;;  %v308_v54 = vunpack.c.l.bf16 %v2371_v47  ;;  %v1906_v60 = vpack.i.bf16 %v306_v45, %v305_v43  ;;  %v322_v0 = vunpack.c.l.bf16 %v2378_v58  ;;  %v1695_v26 = vld [vmem:[%s2219_s20 + $0x5c] sm:$0x1]  ;;  %v1691_v58 = vld [vmem:[%s2219_s20 + $0x34] sm:$0x1]  ;;  %v2485_v47 = vld [vmem:[%s2219_s20 + $0x20] sm:$0xf] }
  0x2c   : > { %v1916_v63 = vpack.i.bf16 %v321_v51, %v320_v48  ;;  %v323_v1 = vunpack.c.l.bf16 %v2381_v59  ;;  %v336_v18 = vunpack.c.l.bf16 %v1654_v61  ;;  %v337_v13 = vunpack.c.l.bf16 %v1655_v62  ;;  %v1690_v59 = vld [vmem:[%s2219_s20 + $0x2c] sm:$0x1] }
  0x2d   : > { %1887 = vrot.lane.b32.xlu1 %v1886_v17, %s2162_s23  ;;  %v1911_v2 = vpack.i.bf16 %v308_v54, %v307_v53  ;;  %v729_v20 = vrot.slane %v302_v31, 1  ;;  %v726_v24 = vrot.slane %v301_v27, 1  ;;  %v327_v44 = vunpack.c.l.bf16 %v2395_v5 }
  0x2e   : > { %1882 = vrot.lane.b32.xlu0 %v1881_v25, %s2162_s23  ;;  %v1921_v17 = vpack.i.bf16 %v323_v1, %v322_v0  ;;  %v326_v25 = vunpack.c.l.bf16 %v2392_v4  ;;  %v324_v19 = vunpack.c.l.bf16 %v1650_v6  ;;  %v325_v29 = vunpack.c.l.bf16 %v1651_v9 }
  0x2f   : > { %v340_v14 = vunpack.c.l.bf16 %v1658_v16  ;;  %v341_v31 = vunpack.c.l.bf16 %v1659_v21  ;;  %v730_v33 = vrot.slane %v337_v13, 1  ;;  %v352_v27 = vunpack.c.l.bf16 %v1662_v22 }
  0x30   : > { %v353_v34 = vunpack.c.l.bf16 %v1663_v23  ;;  %v785_v39 = vrot.slane %v321_v51, 1  ;;  %v1931_v42 = vpack.i.bf16 %v327_v44, %v326_v25  ;;  %v1926_v61 = vpack.i.bf16 %v325_v29, %v324_v19  ;;  %v1667_v51 = vld [vmem:[%s2219_s20 + $0x104] sm:$0x1]  ;;  %v1670_v23 = vld [vmem:[%s2219_s20 + $0x8] sm:$0xf] }
  0x31   : > { %v739_v62 = vrot.slane %v340_v14, 1  ;;  %v731_v6 = vsel %vm549_vm0, %v729_v20, %v730_v33  ;;  %v783_v9 = vrot.slane %v352_v27, 1  ;;  %v357_v22 = vunpack.c.l.bf16 %v1667_v51  ;;  %v1656_v14 = vld [vmem:[%s2219_s20 + $0xa4] sm:$0x1] }
  0x32   : > { %v794_v33 = vrot.slane %v324_v19, 1 }
  0x33   : > { %1892 = vrot.lane.b32.xlu2 %v1891_v32, %s2162_s23  ;;  %v727_v32 = vrot.slane %v336_v18, 1 }
  0x35   : > { %1902 = vrot.lane.b32.xlu1 %v1901_v36, %s2163_s24  ;;  %v741_v36 = vrot.slane %v306_v45, 1  ;;  %v1666_v45 = vld [vmem:[%s2219_s20 + $0xfc] sm:$0x1] }
  0x36   : > { %1897 = vrot.lane.b32.xlu0 %v1896_v37, %s2163_s24  ;;  %v738_v37 = vrot.slane %v305_v43, 1  ;;  %v786_v43 = vrot.slane %v353_v34, 1  ;;  %v356_v20 = vunpack.c.l.bf16 %v1666_v45  ;;  %v1678_v34 = vld [vmem:[%s2219_s20 + $0x50] sm:$0xf] }
  0x38   : > { %v740_v18 = vsel %vm549_vm0, %v738_v37, %v739_v62  ;;  %v787_v21 = vsel %vm549_vm0, %v785_v39, %v786_v43  ;;  %v1679_v37 = vld [vmem:[%s2219_s20 + $0x58] sm:$0xf]  ;;  %v795_v39 = vrot.slane %v356_v20, 1  ;;  %v1687_v62 = vld [vmem:[%s2219_s20 + $0x14] sm:$0x1] }
  0x3a   : > { %v796_v45 = vsel %vm549_vm0, %v794_v33, %v795_v39  ;;  %v1674_v33 = vld [vmem:[%s2219_s20 + $0x28] sm:$0xf] }
  0x3b   : > { %1907 = vrot.lane.b32.xlu2 %v1906_v60, %s2163_s24  ;;  %v782_v60 = vrot.slane %v320_v48, 1 }
  0x3d   : > { %1917 = vrot.lane.b32.xlu1 %v1916_v63, %s2164_s25  ;;  %v742_v63 = vrot.slane %v341_v31, 1  ;;  %v784_v16 = vsel %vm549_vm0, %v782_v60, %v783_v9  ;;  %v1657_v31 = vld [vmem:[%s2219_s20 + $0xac] sm:$0x1]  ;;  %v798_v60 = vrot.slane %v357_v22, 1  ;;  %v408_v9 = vunpack.c.l.bf16 %v1687_v62 }
  0x3e   : > { %1912 = vrot.lane.b32.xlu0 %v1911_v2, %s2163_s24  ;;  %v728_v2 = vsel %vm549_vm0, %v726_v24, %v727_v32  ;;  %v1671_v24 = vld [vmem:[%s2219_s20 + $0x10] sm:$0xf]  ;;  %v797_v32 = vrot.slane %v325_v29, 1  ;;  %v1941_v27 = vpack.i.bf16 %v787_v21, %v784_v16  ;;  %v392_v29 = vunpack.c.l.bf16 %v1679_v37  ;;  %s209_s24 = scalar_lea.vmem %s2961_s2, %s1756_s21 }
  0x3f   : > { %v1936_v48 = vpack.i.bf16 %v731_v6, %v728_v2  ;;  %v743_v13 = vsel %vm549_vm0, %v741_v36, %v742_v63  ;;  %v372_v36 = vunpack.c.l.bf16 %v1670_v23  ;;  %v338_v63 = vunpack.c.l.bf16 %v1656_v14  ;;  %v1664_v23 = vld [vmem:[%s2219_s20 + $0xec] sm:$0x1] }
  0x40   : > { %v339_v2 = vunpack.c.l.bf16 %v1657_v31  ;;  %v391_v6 = vunpack.c.l.bf16 %v1678_v34  ;;  %v799_v51 = vsel %vm549_vm0, %v797_v32, %v798_v60  ;;  %v906_v31 = vrot.slane %v408_v9, 1  ;;  %v1675_v32 = vld [vmem:[%s2219_s20 + $0x30] sm:$0xf] }
  0x41   : > { %v902_v20 = vrot.slane %v372_v36, 1  ;;  %v376_v37 = vunpack.c.l.bf16 %v1674_v33  ;;  %v423_v60 = vunpack.c.l.bf16 %v1694_v15  ;;  %v412_v33 = vunpack.c.l.bf16 %v1691_v58  ;;  %v1681_v58 = vld [vmem:[%s2219_s20 + $0x68] sm:$0xf] }
  0x42   : > { %v736_v16 = vrot.slane %v339_v2, 1  ;;  %v1961_v22 = vpack.i.bf16 %v392_v29, %v391_v6  ;;  %v788_v2 = vrot.slane %v322_v0, 1  ;;  %v747_v15 = vrot.slane %v308_v54, 1  ;;  %v1668_v54 = vld [vmem:[%s2219_s20 + $0x10c] sm:$0x1] }
  0x43   : > { %1922 = vrot.lane.b32.xlu2 %v1921_v17, %s2164_s25  ;;  %v1946_v17 = vpack.i.bf16 %v743_v13, %v740_v18  ;;  %v732_v18 = vrot.slane %v303_v28, 1  ;;  %v733_v13 = vrot.slane %v338_v63, 1  ;;  %v791_v63 = vrot.slane %v323_v1, 1 }
  0x44   : > { %v394_v5 = vunpack.c.l.bf16 %v1681_v58 }
  0x45   : > { %1932 = vrot.lane.b32.xlu1 %v1931_v42, %s2164_s25  ;;  %v373_v42 = vunpack.c.l.bf16 %v1671_v24  ;;  %v1665_v24 = vld [vmem:[%s2219_s20 + $0xf4] sm:$0x1]  ;;  %v734_v28 = vsel %vm549_vm0, %v732_v18, %v733_v13  ;;  %v1661_v18 = vld [vmem:[%s2219_s20 + $0xcc] sm:$0x1] }
  0x46   : > { %1927 = vrot.lane.b32.xlu0 %v1926_v61, %s2164_s25  ;;  %v1686_v61 = vld [vmem:[%s2219_s20 + $0xc] sm:$0x1]  ;;  %v355_v34 = vunpack.c.l.bf16 %v1665_v24  ;;  %s1621_s25 = sshll.u32 %s2970_s12, 1 }
  0x47   : > { %v407_v19 = vunpack.c.l.bf16 %v1686_v61  ;;  %v1951_v43 = vpack.i.bf16 %v373_v42, %v372_v36  ;;  %v905_v21 = vrot.slane %v373_v42, 1  ;;  %v377_v36 = vunpack.c.l.bf16 %v1675_v32 }
  0x48   : > { %v424_v61 = vunpack.c.l.bf16 %v1695_v26  ;;  %v792_v9 = vrot.slane %v355_v34, 1  ;;  %v744_v26 = vrot.slane %v307_v53, 1 }
  0x49   : > { %v903_v14 = vrot.slane %v407_v19, 1  ;;  %v907_v39 = vsel %vm549_vm0, %v905_v21, %v906_v31  ;;  %v1971_v13 = vpack.i.bf16 %v377_v36, %v376_v37  ;;  %v411_v31 = vunpack.c.l.bf16 %v1690_v59  ;;  %v2506_v59 = vld [vmem:[%s2219_s20 + $0x60] sm:$0xf] }
  0x4a   : > { %v962_v21 = vrot.slane %v424_v61, 1  ;;  %v793_v1 = vsel %vm549_vm0, %v791_v63, %v792_v9  ;;  %v918_v61 = vrot.slane %v412_v33, 1  ;;  %v393_v4 = vunpack.c.l.bf16 %v2506_v59 }
  0x4b   : > { %1937 = vrot.lane.b32.xlu2 %v1936_v48, %s2165_s26  ;;  %v735_v48 = vrot.slane %v304_v49, 1  ;;  %v904_v42 = vsel %vm549_vm0, %v902_v20, %v903_v14  ;;  %v2460_v20 = vld [vmem:[%s2219_s20 + $0x70] sm:$0xf] }
  0x4d   : > { %1947 = vrot.lane.b32.xlu1 %v1946_v17, %s2165_s26  ;;  %v1956_v17 = vpack.i.bf16 %v799_v51, %v796_v45  ;;  %v737_v49 = vsel %vm549_vm0, %v735_v48, %v736_v16  ;;  %v958_v45 = vrot.slane %v391_v6, 1  ;;  %v1976_v51 = vpack.i.bf16 %v907_v39, %v904_v42  ;;  %v1660_v48 = vld [vmem:[%s2219_s20 + $0xc4] sm:$0x1] }
  0x4e   : > { %1942 = vrot.lane.b32.xlu0 %v1941_v27, %s2166_s27  ;;  %v354_v27 = vunpack.c.l.bf16 %v1664_v23  ;;  %v1966_v62 = vpack.i.bf16 %v737_v49, %v734_v28  ;;  %v959_v16 = vrot.slane %v423_v60, 1  ;;  %v343_v6 = vunpack.c.l.bf16 %v1661_v18 }
  0x4f   : > { %v395_v23 = vunpack.c.l.bf16 %v2460_v20  ;;  %v917_v42 = vrot.slane %v377_v36, 1  ;;  %v915_v60 = vrot.slane %v411_v31, 1  ;;  %v800_v20 = vrot.slane %v326_v25, 1 }
  0x50   : > { %v789_v19 = vrot.slane %v354_v27, 1  ;;  %v748_v49 = vrot.slane %v343_v6, 1  ;;  %v914_v27 = vrot.slane %v376_v37, 1  ;;  %v1669_v37 = vld [vmem:[%s2219_s20 + $0x114] sm:$0x1] }
  0x51   : > { %v919_v63 = vsel %vm549_vm0, %v917_v42, %v918_v61  ;;  %v1719_v61 = vld [vmem:[%s2219_s20 + $0xa4] sm:$0x1] }
  0x52   : > { %v790_v0 = vsel %vm549_vm0, %v788_v2, %v789_v19  ;;  %v749_v53 = vsel %vm549_vm0, %v747_v15, %v748_v49  ;;  %v916_v36 = vsel %vm549_vm0, %v914_v27, %v915_v60  ;;  %v375_v19 = vunpack.c.l.bf16 %v2485_v47  ;;  %v1676_v49 = vld [vmem:[%s2219_s20 + $0x38] sm:$0xf]  ;;  %v1688_v27 = vld [vmem:[%s2219_s20 + $0x1c] sm:$0x1]  ;;  %v1711_v47 = vld [vmem:[%s2219_s20 + $0xe8] sm:$0xf] }
  0x53   : > { %1952 = vrot.lane.b32.xlu2 %v1951_v43, %s2167_s28  ;;  %v961_v43 = vrot.slane %v392_v29, 1  ;;  %v342_v29 = vunpack.c.l.bf16 %v1660_v48  ;;  %v1981_v32 = vpack.i.bf16 %v793_v1, %v790_v0  ;;  %v1703_v48 = vld [vmem:[%s2219_s20 + $0xa0] sm:$0xf]  ;;  %v2006_v18 = vpack.i.bf16 %v919_v63, %v916_v36  ;;  %v1718_v60 = vld [vmem:[%s2219_s20 + $0x9c] sm:$0x1] }
  0x54   : > { %v443_v6 = vunpack.c.l.bf16 %v1703_v48  ;;  %v477_v63 = vunpack.c.l.bf16 %v1718_v60 }
  0x55   : > { %1962 = vrot.lane.b32.xlu1 %v1961_v22, %s2168_s29  ;;  %v2463_v22 = vld [vmem:[%s2219_s20 + $0x78] sm:$0xf]  ;;  %v963_v14 = vsel %vm549_vm0, %v961_v43, %v962_v21  ;;  %v745_v28 = vrot.slane %v342_v29, 1  ;;  %v358_v43 = vunpack.c.l.bf16 %v1668_v54  ;;  %v803_v21 = vrot.slane %v327_v44, 1 }
  0x56   : > { %1957 = vrot.lane.b32.xlu0 %v1956_v17, %s2166_s27  ;;  %v396_v24 = vunpack.c.l.bf16 %v2463_v22  ;;  %v960_v17 = vsel %vm549_vm0, %v958_v45, %v959_v16  ;;  %v359_v45 = vunpack.c.l.bf16 %v1669_v37  ;;  %v1699_v16 = vld [vmem:[%s2219_s20 + $0x7c] sm:$0x1]  ;;  %v378_v37 = vunpack.c.l.bf16 %v1676_v49 }
  0x57   : > { %v1991_v34 = vpack.i.bf16 %v963_v14, %v960_v17  ;;  %v746_v46 = vsel %vm549_vm0, %v744_v26, %v745_v28  ;;  %v801_v0 = vrot.slane %v358_v43, 1  ;;  %v428_v14 = vunpack.c.l.bf16 %v1699_v16 }
  0x58   : > { %v1986_v39 = vpack.i.bf16 %v396_v24, %v395_v23  ;;  %v1996_v9 = vpack.i.bf16 %v749_v53, %v746_v46  ;;  %v804_v1 = vrot.slane %v359_v45, 1  ;;  %v973_v33 = vrot.slane %v396_v24, 1 }
  0x59   : > { %v802_v25 = vsel %vm549_vm0, %v800_v20, %v801_v0  ;;  %v974_v26 = vrot.slane %v428_v14, 1  ;;  %v2021_v28 = vpack.i.bf16 %v394_v5, %v393_v4  ;;  %v409_v24 = vunpack.c.l.bf16 %v1688_v27  ;;  %v1707_v20 = vld [vmem:[%s2219_s20 + $0xc0] sm:$0xf]  ;;  %v1706_v14 = vld [vmem:[%s2219_s20 + $0xb8] sm:$0xf] }
  0x5a   : > { %v805_v44 = vsel %vm549_vm0, %v803_v21, %v804_v1  ;;  %v462_v45 = vunpack.c.l.bf16 %v1711_v47  ;;  %v1081_v21 = vrot.slane %v443_v6, 1  ;;  %v1079_v1 = vrot.slane %v477_v63, 1  ;;  %v1684_v47 = vld [vmem:[%s2219_s20 + $0x80] sm:$0xf]  ;;  %v1727_v63 = vld [vmem:[%s2219_s20 + $0xec] sm:$0x1] }
  0x5b   : > { %1967 = vrot.lane.b32.xlu2 %v1966_v62, %s2165_s26  ;;  %v2482_v62 = vld [vmem:[%s2219_s20 + $0x18] sm:$0xf]  ;;  %v2016_v42 = vpack.i.bf16 %v805_v44, %v802_v25  ;;  %v967_v25 = vrot.slane %v394_v5, 1 }
  0x5c   : > { %v374_v2 = vunpack.c.l.bf16 %v2482_v62  ;;  %v1710_v62 = vld [vmem:[%s2219_s20 + $0xe0] sm:$0xf] }
  0x5d   : > { %1977 = vrot.lane.b32.xlu1 %v1976_v51, %s2169_s30  ;;  %v1702_v51 = vld [vmem:[%s2219_s20 + $0x98] sm:$0xf]  ;;  %v461_v43 = vunpack.c.l.bf16 %v1710_v62 }
  0x5e   : > { %1972 = vrot.lane.b32.xlu0 %v1971_v13, %s2167_s28  ;;  %v1698_v13 = vld [vmem:[%s2219_s20 + $0x74] sm:$0x1]  ;;  %v2001_v22 = vpack.i.bf16 %v375_v19, %v374_v2  ;;  %v442_v29 = vunpack.c.l.bf16 %v1702_v51  ;;  %v911_v51 = vrot.slane %v375_v19, 1  ;;  %v908_v16 = vrot.slane %v374_v2, 1 }
  0x5f   : > { %v427_v17 = vunpack.c.l.bf16 %v1698_v13  ;;  %v1697_v13 = vld [vmem:[%s2219_s20 + $0x6c] sm:$0x1]  ;;  %v2031_v44 = vpack.i.bf16 %v462_v45, %v461_v43  ;;  %v2536_v19 = vrot.slane %v378_v37, 1  ;;  %v447_v2 = vunpack.c.l.bf16 %v1707_v20 }
  0x60   : > { %v2011_v31 = vpack.i.bf16 %v443_v6, %v442_v29  ;;  %v1078_v58 = vrot.slane %v442_v29, 1  ;;  %v2539_v6 = vrot.slane %v461_v43, 1  ;;  %v446_v29 = vunpack.c.l.bf16 %v1706_v14  ;;  %v1700_v14 = vld [vmem:[%s2219_s20 + $0x84] sm:$0x1] }
  0x61   : > { %v971_v15 = vrot.slane %v427_v17, 1  ;;  %v494_v20 = vunpack.c.l.bf16 %v1727_v63 }
  0x62   : > { %v1080_v49 = vsel %vm549_vm0, %v1078_v58, %v1079_v1 }
  0x63   : > { %1982 = vrot.lane.b32.xlu2 %v1981_v32, %s2166_s27  ;;  %v970_v32 = vrot.slane %v395_v23, 1  ;;  %v975_v23 = vsel %vm549_vm0, %v973_v33, %v974_v26  ;;  %v426_v33 = vunpack.c.l.bf16 %v1697_v13  ;;  %v397_v13 = vunpack.c.l.bf16 %v1684_v47 }
  0x64   : > { %v429_v47 = vunpack.c.l.bf16 %v1700_v14 }
  0x65   : > { %1992 = vrot.lane.b32.xlu1 %v1991_v34, %s2170_s4  ;;  %v1689_v34 = vld [vmem:[%s2219_s20 + $0x24] sm:$0x1]  ;;  %v972_v46 = vsel %vm549_vm0, %v970_v32, %v971_v15  ;;  %v964_v32 = vrot.slane %v393_v4, 1 }
  0x66   : > { %1987 = vrot.lane.b32.xlu0 %v1986_v39, %s2168_s29  ;;  %v1677_v39 = vld [vmem:[%s2219_s20 + $0x40] sm:$0xf]  ;;  %v410_v53 = vunpack.c.l.bf16 %v1689_v34  ;;  %v2026_v48 = vpack.i.bf16 %v975_v23, %v972_v46  ;;  %v2550_v34 = vrot.slane %v447_v2, 1  ;;  %v1692_v46 = vld [vmem:[%s2219_s20 + $0x3c] sm:$0x1] }
  0x67   : > { %v379_v36 = vunpack.c.l.bf16 %v1677_v39  ;;  %v1715_v39 = vld [vmem:[%s2219_s20 + $0x108] sm:$0xf]  ;;  %v1693_v23 = vld [vmem:[%s2219_s20 + $0x44] sm:$0x1] }
  0x68   : > { %v912_v59 = vrot.slane %v410_v53, 1  ;;  %v2046_v53 = vpack.i.bf16 %v447_v2, %v446_v29 }
  0x69   : > { %v2036_v0 = vpack.i.bf16 %v379_v36, %v378_v37  ;;  %v2534_v15 = vrot.slane %v379_v36, 1  ;;  %v1685_v37 = vld [vmem:[%s2219_s20 + $0x88] sm:$0xf]  ;;  %v1726_v36 = vld [vmem:[%s2219_s20 + $0xe4] sm:$0x1] }
  0x6a   : > { %v913_v5 = vsel %vm549_vm0, %v911_v51, %v912_v59 }
  0x6b   : > { %1997 = vrot.lane.b32.xlu2 %v1996_v9, %s2165_s26  ;;  %v478_v9 = vunpack.c.l.bf16 %v1719_v61  ;;  %v968_v61 = vrot.slane %v426_v33, 1  ;;  %v1704_v33 = vld [vmem:[%s2219_s20 + $0xa8] sm:$0xf] }
  0x6d   : > { %2007 = vrot.lane.b32.xlu1 %v2006_v18, %s2169_s30  ;;  %v1696_v18 = vld [vmem:[%s2219_s20 + $0x64] sm:$0x1]  ;;  %v1082_v17 = vrot.slane %v478_v9, 1  ;;  %v2561_v9 = vrot.slane %v446_v29, 1  ;;  %v969_v58 = vsel %vm549_vm0, %v967_v25, %v968_v61 }
  0x6e   : > { %2002 = vrot.lane.b32.xlu0 %v2001_v22, %s2167_s28  ;;  %v909_v22 = vrot.slane %v409_v24, 1 }
  0x6f   : > { %v1083_v27 = vsel %vm549_vm0, %v1081_v21, %v1082_v17  ;;  %v493_v21 = vunpack.c.l.bf16 %v1726_v36  ;;  %v2575_v17 = vrot.slane %v397_v13, 1  ;;  %v444_v36 = vunpack.c.l.bf16 %v1704_v33 }
  0x70   : > { %v910_v26 = vsel %vm549_vm0, %v908_v16, %v909_v22  ;;  %v2051_v24 = vpack.i.bf16 %v1083_v27, %v1080_v49  ;;  %v398_v16 = vunpack.c.l.bf16 %v1685_v37  ;;  %v1138_v27 = vrot.slane %v494_v20, 1  ;;  %v1721_v20 = vld [vmem:[%s2219_s20 + $0xb4] sm:$0x1] }
  0x71   : > { %v2041_v62 = vpack.i.bf16 %v913_v5, %v910_v26  ;;  %v1135_v49 = vrot.slane %v493_v21, 1  ;;  %v1720_v21 = vld [vmem:[%s2219_s20 + $0xac] sm:$0x1] }
  0x72   : > { %v2573_v1 = vrot.slane %v398_v16, 1  ;;  %v2056_v5 = vpack.i.bf16 %v398_v16, %v397_v13  ;;  %v2601_v13 = vld [vmem:[%s2219_s20 + $0xf0] sm:$0xf]  ;;  %v2604_v16 = vld [vmem:[%s2219_s20 + $0xf8] sm:$0xf] }
  0x73   : > { %2012 = vrot.lane.b32.xlu2 %v2011_v31, %s2171_s5  ;;  %v425_v31 = vunpack.c.l.bf16 %v1696_v18  ;;  %v414_v18 = vunpack.c.l.bf16 %v1693_v23  ;;  %v1136_v8 = vsel %vm549_vm0, %v2539_v6, %v1135_v49  ;;  %v463_v6 = vunpack.c.l.bf16 %v2601_v13 }
  0x75   : > { %v2526_v54 = vpop.permute.xlu2 %1857  ;;  %2022 = vrot.lane.b32.xlu1 %v2021_v28, %s2168_s29  ;;  %v2546_v28 = vrot.slane %v462_v45, 1  ;;  %v965_v60 = vrot.slane %v425_v31, 1  ;;  %v466_v45 = vunpack.c.l.bf16 %v1715_v39  ;;  %v924_v25 = vrot.slane %v414_v18, 1  ;;  %v1723_v39 = vld [vmem:[%s2219_s20 + $0xc4] sm:$0x1] }
  0x76   : > { %2017 = vrot.lane.b32.xlu0 %v2016_v42, %s2166_s27  ;;  %v1714_v42 = vld [vmem:[%s2219_s20 + $0x100] sm:$0xf]  ;;  %v1859_v61 = vunpack.i.l.bf16 %v2526_v54 }
  0x77   : > { %v465_v43 = vunpack.c.l.bf16 %v1714_v42  ;;  %v2564_v51 = vsel %vm549_vm0, %v964_v32, %v965_v60  ;;  %v2567_v22 = vrot.slane %v466_v45, 1  ;;  %v1705_v32 = vld [vmem:[%s2219_s20 + $0xb0] sm:$0xf]  ;;  %v1722_v42 = vld [vmem:[%s2219_s20 + $0xbc] sm:$0x1]  ;;  %v1860_v60 = vunpack.i.h.bf16 %v2526_v54 }
  0x78   : > { %v2061_v26 = vpack.i.bf16 %v969_v58, %v2564_v51  ;;  %v445_v63 = vunpack.c.l.bf16 %v1705_v32  ;;  %v925_v18 = vsel %vm549_vm0, %v2534_v15, %v924_v25  ;;  %v977_v15 = vrot.slane %v429_v47, 1 }
  0x79   : > { %v2569_v59 = vrot.slane %v465_v43, 1  ;;  %v2066_v31 = vpack.i.bf16 %v466_v45, %v465_v43  ;;  %v481_v43 = vunpack.c.l.bf16 %v1722_v42  ;;  %v482_v45 = vunpack.c.l.bf16 %v1723_v39 }
  0x7a   : > { %v479_v25 = vunpack.c.l.bf16 %v1720_v21  ;;  %v2081_v39 = vpack.i.bf16 %v445_v63, %v444_v36  ;;  %v2630_v47 = vsel %vm549_vm0, %v2575_v17, %v977_v15 }
  0x7b   : > { %2027 = vrot.lane.b32.xlu2 %v2026_v48, %s2170_s4  ;;  %v413_v48 = vunpack.c.l.bf16 %v1692_v46  ;;  %v1094_v33 = vrot.slane %v482_v45, 1  ;;  %v1709_v45 = vld [vmem:[%s2219_s20 + $0xd0] sm:$0xf] }
  0x7d   : > { %v2543_v4 = vpop.permute.xlu2 %1862  ;;  %2037 = vrot.lane.b32.xlu1 %v2036_v0, %s2167_s28  ;;  %v921_v2 = vrot.slane %v413_v48, 1  ;;  %s217_s28 = scalar_lea.vmem %s2962_s3, %s1621_s25 }
  0x7e   : > { %2032 = vrot.lane.b32.xlu0 %v2031_v44, %s2172_s6  ;;  %v1701_v44 = vld [vmem:[%s2219_s20 + $0x8c] sm:$0x1]  ;;  %v1865_v49 = vunpack.i.h.bf16 %v2543_v4 }
  0x7f   : > { %v430_v46 = vunpack.c.l.bf16 %v1701_v44  ;;  %v922_v48 = vsel %vm549_vm0, %v2536_v19, %v921_v2  ;;  %v1091_v44 = vrot.slane %v481_v43, 1  ;;  %v1708_v43 = vld [vmem:[%s2219_s20 + $0xc8] sm:$0xf] }
  0x81   : > { %v980_v58 = vrot.slane %v430_v46, 1  ;;  %v1730_v46 = vld [vmem:[%s2219_s20 + $0x104] sm:$0x1] }
  0x82   : > { %v497_v30 = vunpack.c.l.bf16 %v1730_v46 }
  0x83   : > { %2042 = vrot.lane.b32.xlu2 %v2041_v62, %s2169_s30 }
  0x85   : > { %v1878_v0 = vpop.permute.xlu2 %1877  ;;  %2052 = vrot.lane.b32.xlu1 %v2051_v24, %s2173_s7 }
  0x86   : > { %2047 = vrot.lane.b32.xlu0 %v2046_v53, %s2171_s5  ;;  %v1880_v23 = vunpack.i.h.bf16 %v1878_v0  ;;  %v1879_v24 = vunpack.i.l.bf16 %v1878_v0 }
  0x87   : > { %v2582_v29 = vpop.permute.xlu1 %1847 }
  0x88   : > { %v1838_v62 = vpop.permute.xlu0 %1837 }
  0x89   : > { %v1840_v53 = vunpack.i.h.bf16 %v1838_v62  ;;  %v1839_v37 = vunpack.i.l.bf16 %v1838_v62  ;;  %v2076_v62 = vpack.i.bf16 %v925_v18, %v922_v48  ;;  %v1850_v18 = vunpack.i.h.bf16 %v2582_v29 }
  0x8b   : > { %v1183_v51 = vsel %vm1182_vm1, %v231_v10, %v1839_v37  ;;  %v1184_v54 = vsel %vm1182_vm1, %v232_v11, %v1840_v53  ;;  %2057 = vrot.lane.b32.xlu2 %v2056_v5, %s2168_s29  ;;  %v1139_v11 = vsel %vm549_vm0, %v2546_v28, %v1138_v27  ;;  %v464_v28 = vunpack.c.l.bf16 %v2604_v16 }
  0x8c   : > { %v1192_v7 = vsel %vm1191_vm2, %v1183_v51, %v1859_v61  ;;  %v1193_v10 = vsel %vm1191_vm2, %v1184_v54, %v1860_v60  ;;  %v2071_v2 = vpack.i.bf16 %v1139_v11, %v1136_v8  ;;  %v480_v5 = vunpack.c.l.bf16 %v1721_v20 }
  0x8d   : > { %v2614_v19 = vpop.permute.xlu2 %1892  ;;  %2067 = vrot.lane.b32.xlu1 %v2066_v31, %s2172_s6  ;;  %v2618_v0 = vsel %vm1200_vm3, %v1192_v7, %v1879_v24  ;;  %v2621_v14 = vsel %vm1200_vm3, %v1193_v10, %v1880_v23  ;;  %v1087_v31 = vrot.slane %v445_v63, 1  ;;  %v1864_v27 = vunpack.i.l.bf16 %v2543_v4  ;;  %v1731_v23 = vld [vmem:[%s2219_s20 + $0x10c] sm:$0x1] }
  0x8e   : > { %2062 = vrot.lane.b32.xlu0 %v2061_v26, %s2170_s4  ;;  %v1084_v26 = vrot.slane %v444_v36, 1  ;;  %v2096_v24 = vpack.i.bf16 %v464_v28, %v463_v6  ;;  %v2640_v4 = vsel %vm549_vm0, %v2573_v1, %v980_v58  ;;  %v1092_v53 = vsel %vm549_vm0, %v2561_v9, %v1091_v44 }
  0x8f   : > { %v1853_v32 = vpop.permute.xlu1 %1852  ;;  %v1095_v37 = vsel %vm549_vm0, %v2550_v34, %v1094_v33  ;;  %v1085_v63 = vrot.slane %v479_v25, 1  ;;  %v1088_v1 = vrot.slane %v480_v5, 1  ;;  %v498_v51 = vunpack.c.l.bf16 %v1731_v23 }
  0x90   : > { %v1843_v42 = vpop.permute.xlu0 %1842  ;;  %v1854_v54 = vunpack.i.l.bf16 %v1853_v32  ;;  %v2086_v48 = vpack.i.bf16 %v1095_v37, %v1092_v53  ;;  %v1849_v7 = vunpack.i.l.bf16 %v2582_v29  ;;  %v448_v10 = vunpack.c.l.bf16 %v1708_v43 }
  0x91   : > { %v1845_v60 = vunpack.i.h.bf16 %v1843_v42  ;;  %v1844_v61 = vunpack.i.l.bf16 %v1843_v42  ;;  %v449_v8 = vunpack.c.l.bf16 %v1709_v45  ;;  %v1895_v11 = vunpack.i.h.bf16 %v2614_v19 }
  0x92   : > { %v1894_v21 = vunpack.i.l.bf16 %v2614_v19  ;;  %v2672_v15 = vsel %vm549_vm0, %v1084_v26, %v1085_v63  ;;  %v2675_v58 = vsel %vm549_vm0, %v1087_v31, %v1088_v1  ;;  %v1189_v25 = vsel %vm1182_vm1, %v237_v55, %v1854_v54  ;;  %v1725_v31 = vld [vmem:[%s2219_s20 + $0xd4] sm:$0x1] }
  0x93   : > { %v1185_v17 = vsel %vm1182_vm1, %v233_v38, %v1844_v61  ;;  %v1186_v36 = vsel %vm1182_vm1, %v234_v50, %v1845_v60  ;;  %2072 = vrot.lane.b32.xlu2 %v2071_v2, %s2174_s8  ;;  %v1855_v38 = vunpack.i.h.bf16 %v1853_v32  ;;  %v2091_v50 = vpack.i.bf16 %v2640_v4, %v2630_v47  ;;  %v1728_v26 = vld [vmem:[%s2219_s20 + $0xf4] sm:$0x1] }
  0x94   : > { %v2656_v9 = vsel %vm1191_vm2, %v1185_v17, %v1864_v27  ;;  %v2659_v34 = vsel %vm1191_vm2, %v1186_v36, %v1865_v49  ;;  %v1147_v32 = vrot.slane %v497_v30, 1  ;;  %v1150_v2 = vrot.slane %v498_v51, 1  ;;  %v1724_v27 = vld [vmem:[%s2219_s20 + $0xcc] sm:$0x1]  ;;  %v1717_v36 = vld [vmem:[%s2219_s20 + $0x118] sm:$0xf] }
  0x95   : > { %v2661_v35 = vpop.permute.xlu2 %1907  ;;  %2082 = vrot.lane.b32.xlu1 %v2081_v39, %s2171_s5  ;;  %v1190_v19 = vsel %vm1182_vm1, %v238_v56, %v1855_v38  ;;  %v1187_v42 = vsel %vm1182_vm1, %v235_v3, %v1849_v7  ;;  %v1188_v39 = vsel %vm1182_vm1, %v236_v12, %v1850_v18  ;;  %v483_v61 = vunpack.c.l.bf16 %v1724_v27  ;;  %v1733_v18 = vld [vmem:[%s2219_s20 + $0x11c] sm:$0x1] }
  0x96   : > { %2077 = vrot.lane.b32.xlu0 %v2076_v62, %s2169_s30  ;;  %v1148_v57 = vsel %vm549_vm0, %v2569_v59, %v1147_v32  ;;  %v1151_v12 = vsel %vm549_vm0, %v2567_v22, %v1150_v2  ;;  %v484_v62 = vunpack.c.l.bf16 %v1725_v31  ;;  %v1143_v46 = vrot.slane %v464_v28, 1 }
  0x97   : > { %v1873_v20 = vpop.permute.xlu1 %1872  ;;  %v1140_v23 = vrot.slane %v463_v6, 1  ;;  %v495_v4 = vunpack.c.l.bf16 %v1728_v26  ;;  %v496_v53 = vunpack.c.l.bf16 %v1729_v41  ;;  %v2111_v22 = vpack.i.bf16 %v2675_v58, %v2672_v15 }
  0x98   : > { %v1875_v44 = vunpack.i.h.bf16 %v1873_v20  ;;  %v1874_v29 = vunpack.i.l.bf16 %v1873_v20  ;;  %v1868_v33 = vpop.permute.xlu0 %1867  ;;  %v1099_v59 = vrot.slane %v449_v8, 1  ;;  %v2106_v37 = vpack.i.bf16 %v449_v8, %v448_v10 }
  0x99   : > { %v1870_v5 = vunpack.i.h.bf16 %v1868_v33  ;;  %v1869_v49 = vunpack.i.l.bf16 %v1868_v33  ;;  %v1910_v16 = vunpack.i.h.bf16 %v2661_v35  ;;  %v1909_v28 = vunpack.i.l.bf16 %v2661_v35 }
  0x9a   : > { %v1199_v40 = vsel %vm1191_vm2, %v1190_v19, %v1875_v44  ;;  %v1198_v55 = vsel %vm1191_vm2, %v1189_v25, %v1874_v29  ;;  %v1096_v6 = vrot.slane %v448_v10, 1  ;;  %v2101_v17 = vpack.i.bf16 %v1151_v12, %v1148_v57 }
  0x9b   : > { %v1197_v56 = vsel %vm1191_vm2, %v1188_v39, %v1870_v5  ;;  %v1196_v60 = vsel %vm1191_vm2, %v1187_v42, %v1869_v49  ;;  %2087 = vrot.lane.b32.xlu2 %v2086_v48, %s2173_s7  ;;  %v2699_v52 = vsel %vm1200_vm3, %v1198_v55, %v1894_v21  ;;  %v2702_v3 = vsel %vm1200_vm3, %v1199_v40, %v1895_v11  ;;  %v1732_v48 = vld [vmem:[%s2219_s20 + $0x114] sm:$0x1] }
  0x9c   : > { %v1097_v45 = vrot.slane %v483_v61, 1  ;;  %v1100_v30 = vrot.slane %v484_v62, 1  ;;  %v1141_v54 = vrot.slane %v495_v4, 1  ;;  %v468_v10 = vunpack.c.l.bf16 %v1717_v36 }
  0x9d   : > { %v2708_v47 = vpop.permute.xlu2 %1922  ;;  %2097 = vrot.lane.b32.xlu1 %v2096_v24, %s2172_s6  ;;  %v1716_v24 = vld [vmem:[%s2219_s20 + $0x110] sm:$0xf]  ;;  %v499_v58 = vunpack.c.l.bf16 %v1732_v48  ;;  %v500_v44 = vunpack.c.l.bf16 %v1733_v18  ;;  %vm1454_vm1 = vcmask 1040384  }
  0x9e   : > { %2092 = vrot.lane.b32.xlu0 %v2091_v50, %s2170_s4  ;;  %v1144_v50 = vrot.slane %v496_v53, 1  ;;  %v467_v8 = vunpack.c.l.bf16 %v1716_v24  ;;  %v1098_v33 = vsel %vm549_vm0, %v1096_v6, %v1097_v45  ;;  %v1925_v32 = vunpack.i.h.bf16 %v2708_v47 }
  0x9f   : > { %v1888_v13 = vpop.permute.xlu1 %1887  ;;  %v1924_v25 = vunpack.i.l.bf16 %v2708_v47  ;;  %v1155_v5 = vrot.slane %v468_v10, 1  ;;  %v1153_v40 = vrot.slane %v499_v58, 1  ;;  %v1156_v55 = vrot.slane %v500_v44, 1 }
  0xa0   : > { %v1890_v63 = vunpack.i.h.bf16 %v1888_v13  ;;  %v1889_v1 = vunpack.i.l.bf16 %v1888_v13  ;;  %v1883_v43 = vpop.permute.xlu0 %1882  ;;  %v1145_v2 = vsel %vm549_vm0, %v1143_v46, %v1144_v50  ;;  %v2116_v49 = vpack.i.bf16 %v468_v10, %v467_v8 }
  0xa1   : > { %v1885_v51 = vunpack.i.h.bf16 %v1883_v43  ;;  %v1884_v38 = vunpack.i.l.bf16 %v1883_v43  ;;  %v1152_v27 = vrot.slane %v467_v8, 1  ;;  %v1157_v4 = vsel %vm549_vm0, %v1155_v5, %v1156_v55  ;;  %v1760_v55 = vld [vmem:[%s2960_s1 + $0x18] sm:$0xff] }
  0xa2   : > { %v1205_v7 = vsel %vm1200_vm3, %v1196_v60, %v1889_v1  ;;  %v1206_v35 = vsel %vm1200_vm3, %v1197_v56, %v1890_v63  ;;  %1370 = vmatpush.bf16.msra.mxu0 %v1760_v55  ;;  %1785 = vmatpush.bf16.msra.mxu2 %v1760_v55 }
  0xa3   : > { %v1203_v11 = vsel %vm1200_vm3, %v2656_v9, %v1884_v38  ;;  %v1204_v21 = vsel %vm1200_vm3, %v2659_v34, %v1885_v51  ;;  %2102 = vrot.lane.b32.xlu2 %v2101_v17, %s2174_s8  ;;  %v2732_v20 = vsel %vm1209_vm4, %v1205_v7, %v1909_v28  ;;  %v2735_v15 = vsel %vm1209_vm4, %v1206_v35, %v1910_v16 }
  0xa4   : > { %v1101_v9 = vsel %vm549_vm0, %v1099_v59, %v1100_v30  ;;  %v1142_v34 = vsel %vm549_vm0, %v1140_v23, %v1141_v54  ;;  %v1154_v23 = vsel %vm549_vm0, %v1152_v27, %v1153_v40  ;;  %1784 = vmatpush.bf16.msra.mxu1 %v1760_v55  ;;  %1786 = vmatpush.bf16.msra.mxu3 %v1760_v55  ;;  %vm1353_vm0 = vcmask 523264  }
  0xa5   : > { %v1938_v29 = vpop.permute.xlu2 %1937  ;;  %2112 = vrot.lane.b32.xlu1 %v2111_v22, %s2173_s7  ;;  %v2126_v56 = vpack.i.bf16 %v1101_v9, %v1098_v33  ;;  %v2121_v12 = vpack.i.bf16 %v1145_v2, %v1142_v34 }
  0xa6   : > { %2107 = vrot.lane.b32.xlu0 %v2106_v37, %s2171_s5  ;;  %v1940_v22 = vunpack.i.h.bf16 %v1938_v29  ;;  %v2131_v37 = vpack.i.bf16 %v1157_v4, %v1154_v23 }
  0xa7   : > { %v1903_v19 = vpop.permute.xlu1 %1902 }
  0xa8   : > { %v1905_v31 = vunpack.i.h.bf16 %v1903_v19  ;;  %v1904_v42 = vunpack.i.l.bf16 %v1903_v19  ;;  %v1898_v39 = vpop.permute.xlu0 %1897 }
  0xa9   : > { %v1900_v26 = vunpack.i.h.bf16 %v1898_v39  ;;  %v1899_v41 = vunpack.i.l.bf16 %v1898_v39 }
  0xaa   : > { %v1212_v60 = vsel %vm1209_vm4, %v1203_v11, %v1904_v42  ;;  %v1213_v57 = vsel %vm1209_vm4, %v1204_v21, %v1905_v31 }
  0xab   : > { %v1210_v61 = vsel %vm1209_vm4, %v2618_v0, %v1899_v41  ;;  %v1211_v62 = vsel %vm1209_vm4, %v2621_v14, %v1900_v26  ;;  %v1221_v47 = vsel %vm1218_vm5, %v1212_v60, %v1924_v25  ;;  %v1222_v46 = vsel %vm1218_vm5, %v1213_v57, %v1925_v32  ;;  %2117 = vrot.lane.b32.xlu2 %v2116_v49, %s2172_s6  ;;  %v1759_v60 = vld [vmem:[%s2960_s1 + $0x10] sm:$0xff] }
  0xac   : > { %v1939_v0 = vunpack.i.l.bf16 %v1938_v29  ;;  %1371 = vmatpush.bf16.msra.mxu0 %v1759_v60  ;;  %1788 = vmatpush.bf16.msra.mxu2 %v1759_v60 }
  0xad   : > { %v1953_v53 = vpop.permute.xlu2 %1952  ;;  %2127 = vrot.lane.b32.xlu1 %v2126_v56, %s2173_s7  ;;  %1787 = vmatpush.bf16.msra.mxu1 %v1759_v60 }
  0xae   : > { %2122 = vrot.lane.b32.xlu0 %v2121_v12, %s2174_s8  ;;  %v1955_v21 = vunpack.i.h.bf16 %v1953_v53  ;;  %v1954_v58 = vunpack.i.l.bf16 %v1953_v53  ;;  %v1758_v12 = vld [vmem:[%s2960_s1 + $0x8] sm:$0xff]  ;;  %1789 = vmatpush.bf16.msra.mxu3 %v1759_v60 }
  0xaf   : > { %v1918_v59 = vpop.permute.xlu1 %1917 }
  0xb0   : > { %v1920_v14 = vunpack.i.h.bf16 %v1918_v59  ;;  %v1919_v16 = vunpack.i.l.bf16 %v1918_v59  ;;  %v1913_v28 = vpop.permute.xlu0 %1912  ;;  %1372 = vmatpush.bf16.msra.mxu0 %v1758_v12  ;;  %1791 = vmatpush.bf16.msra.mxu2 %v1758_v12 }
  0xb1   : > { %v1915_v13 = vunpack.i.h.bf16 %v1913_v28  ;;  %v1914_v6 = vunpack.i.l.bf16 %v1913_v28  ;;  %1790 = vmatpush.bf16.msra.mxu1 %v1758_v12 }
  0xb2   : > { %v1219_v17 = vsel %vm1218_vm5, %v1210_v61, %v1919_v16  ;;  %v1220_v24 = vsel %vm1218_vm5, %v1211_v62, %v1920_v14  ;;  %1792 = vmatpush.bf16.msra.mxu3 %v1758_v12 }
  0xb3   : > { %v1216_v36 = vsel %vm1209_vm4, %v2699_v52, %v1914_v6  ;;  %v1217_v63 = vsel %vm1209_vm4, %v2702_v3, %v1915_v13  ;;  %v1228_v1 = vsel %vm1227_vm6, %v1219_v17, %v1939_v0  ;;  %v1229_v43 = vsel %vm1227_vm6, %v1220_v24, %v1940_v22  ;;  %2132 = vrot.lane.b32.xlu2 %v2131_v37, %s2174_s8 }
  0xb5   : > { %v1968_v45 = vpop.permute.xlu2 %1967 }
  0xb6   : > { %v1970_v30 = vunpack.i.h.bf16 %v1968_v45  ;;  %v1969_v51 = vunpack.i.l.bf16 %v1968_v45 }
  0xb7   : > { %v1933_v38 = vpop.permute.xlu1 %1932 }
  0xb8   : > { %v1230_v54 = vsel %vm1227_vm6, %v1221_v47, %v1969_v51  ;;  %v1231_v50 = vsel %vm1227_vm6, %v1222_v46, %v1970_v30  ;;  %v1935_v48 = vunpack.i.h.bf16 %v1933_v38  ;;  %v1934_v18 = vunpack.i.l.bf16 %v1933_v38  ;;  %v2769_v52 = vpop.permute.xlu0 %1927  ;;  %v1757_v47 = vld [vmem:[%s2960_s1] sm:$0xff] }
  0xb9   : > { %1373 = vmatpush.bf16.msra.mxu0 %v1757_v47  ;;  %1794 = vmatpush.bf16.msra.mxu2 %v1757_v47  ;;  %v1929_v59 = vunpack.i.l.bf16 %v2769_v52  ;;  %v1930_v37 = vunpack.i.h.bf16 %v2769_v52 }
  0xba   : > { %v1225_v3 = vsel %vm1218_vm5, %v1216_v36, %v1934_v18  ;;  %v1226_v7 = vsel %vm1218_vm5, %v1217_v63, %v1935_v48  ;;  %1793 = vmatpush.bf16.msra.mxu1 %v1757_v47  ;;  %1795 = vmatpush.bf16.msra.mxu3 %v1757_v47 }
  0xbb   : > { %v1224_v38 = vsel %vm1218_vm5, %v2735_v15, %v1930_v37 }
  0xbd   : > { %v1983_v35 = vpop.permute.xlu2 %1982 }
  0xbe   : > { %v1985_v8 = vunpack.i.h.bf16 %v1983_v35  ;;  %v1984_v10 = vunpack.i.l.bf16 %v1983_v35 }
  0xbf   : > { %v2773_v11 = vpop.permute.xlu1 %1947 }
  0xc0   : > { %v2776_v44 = vsel %vm1236_vm7, %v1230_v54, %v1984_v10  ;;  %v2779_v29 = vsel %vm1236_vm7, %v1231_v50, %v1985_v8  ;;  %v1943_v33 = vpop.permute.xlu0 %1942  ;;  %v1949_v28 = vunpack.i.l.bf16 %v2773_v11  ;;  %v1950_v17 = vunpack.i.h.bf16 %v2773_v11 }
  0xc1   : > { %v1945_v9 = vunpack.i.h.bf16 %v1943_v33  ;;  %v1944_v32 = vunpack.i.l.bf16 %v1943_v33 }
  0xc3   : > { %v1237_v34 = vsel %vm1236_vm7, %v1228_v1, %v1944_v32  ;;  %v1238_v2 = vsel %vm1236_vm7, %v1229_v43, %v1945_v9  ;;  %v1223_v1 = vsel %vm1218_vm5, %v2732_v20, %v1929_v59 }
  0xc4   : > { %v1246_v25 = vsel %vm1245_vm8, %v1237_v34, %v1954_v58  ;;  %v2785_v19 = vsel %vm1245_vm8, %v1238_v2, %v1955_v21  ;;  %v1232_v48 = vsel %vm1227_vm6, %v1223_v1, %v1949_v28 }
  0xc5   : > { %v1998_v5 = vpop.permute.xlu2 %1997 }
  0xc6   : > { %v2000_v49 = vunpack.i.h.bf16 %v1998_v5  ;;  %v1999_v27 = vunpack.i.l.bf16 %v1998_v5 }
  0xc7   : > { %v1963_v31 = vpop.permute.xlu1 %1962 }
  0xc8   : > { %v2788_v42 = vsel %vm1227_vm6, %v1225_v3, %v1999_v27  ;;  %v2791_v39 = vsel %vm1227_vm6, %v1226_v7, %v2000_v49  ;;  %v2793_v40 = vpop.permute.xlu0 %1957  ;;  %v1964_v14 = vunpack.i.l.bf16 %v1963_v31  ;;  %v1965_v13 = vunpack.i.h.bf16 %v1963_v31 }
  0xc9   : > { %v1960_v43 = vunpack.i.h.bf16 %v2793_v40  ;;  %v1959_v45 = vunpack.i.l.bf16 %v2793_v40  ;;  %v1233_v3 = vsel %vm1227_vm6, %v1224_v38, %v1950_v17 }
  0xca   : > { %v1255_v54 = vsel %vm1254_vm9, %v1246_v25, %v1964_v14  ;;  %v1256_v18 = vsel %vm1254_vm9, %v2785_v19, %v1965_v13 }
  0xcb   : > { %v1241_v8 = vsel %vm1236_vm7, %v1232_v48, %v1959_v45  ;;  %v1242_v10 = vsel %vm1236_vm7, %v1233_v3, %v1960_v43 }
  0xcd   : > { %v2798_v26 = vpop.permute.xlu2 %2012 }
  0xce   : > { %v2014_v52 = vunpack.i.l.bf16 %v2798_v26  ;;  %v2015_v15 = vunpack.i.h.bf16 %v2798_v26 }
  0xcf   : > { %v1978_v41 = vpop.permute.xlu1 %1977 }
  0xd0   : > { %v2800_v56 = vpop.permute.xlu0 %1972  ;;  %v1979_v6 = vunpack.i.l.bf16 %v1978_v41  ;;  %v1980_v24 = vunpack.i.h.bf16 %v1978_v41 }
  0xd1   : > { %v1974_v50 = vunpack.i.l.bf16 %v2800_v56  ;;  %v1975_v11 = vunpack.i.h.bf16 %v2800_v56 }
  0xd2   : > { %v1264_v20 = vsel %vm1263_vm10, %v1255_v54, %v1979_v6  ;;  %v1265_v7 = vsel %vm1263_vm10, %v1256_v18, %v1980_v24 }
  0xd3   : > { %v1250_v58 = vsel %vm1245_vm8, %v1241_v8, %v1974_v50  ;;  %v1251_v56 = vsel %vm1245_vm8, %v1242_v10, %v1975_v11 }
  0xd5   : > { %v2805_v57 = vpop.permute.xlu2 %2027 }
  0xd6   : > { %v2030_v60 = vunpack.i.h.bf16 %v2805_v57  ;;  %v2029_v47 = vunpack.i.l.bf16 %v2805_v57 }
  0xd7   : > { %v1993_v61 = vpop.permute.xlu1 %1992 }
  0xd8   : > { %v2810_v62 = vpop.permute.xlu0 %1987  ;;  %v1994_v36 = vunpack.i.l.bf16 %v1993_v61  ;;  %v1995_v30 = vunpack.i.h.bf16 %v1993_v61 }
  0xd9   : > { %v1990_v34 = vunpack.i.h.bf16 %v2810_v62  ;;  %v1989_v2 = vunpack.i.l.bf16 %v2810_v62 }
  0xda   : > { %v1273_v35 = vsel %vm1272_vm11, %v1264_v20, %v1994_v36  ;;  %v1274_v21 = vsel %vm1272_vm11, %v1265_v7, %v1995_v30 }
  0xdb   : > { %v1282_v25 = vsel %vm1281_vm12, %v1273_v35, %v2014_v52  ;;  %v1283_v19 = vsel %vm1281_vm12, %v1274_v21, %v2015_v15  ;;  %v1259_v62 = vsel %vm1254_vm9, %v1250_v58, %v1989_v2 }
  0xdd   : > { %v2815_v46 = vpop.permute.xlu2 %2042 }
  0xdf   : > { %v2817_v23 = vpop.permute.xlu1 %2007 }
  0xe0   : > { %v2819_v4 = vpop.permute.xlu0 %2002  ;;  %v2010_v31 = vunpack.i.h.bf16 %v2817_v23  ;;  %v2009_v40 = vunpack.i.l.bf16 %v2817_v23  ;;  %v1260_v23 = vsel %vm1254_vm9, %v1251_v56, %v1990_v34 }
  0xe2   : > { %v1268_v28 = vsel %vm1263_vm10, %v1259_v62, %v2009_v40  ;;  %v1269_v13 = vsel %vm1263_vm10, %v1260_v23, %v2010_v31  ;;  %v2045_v31 = vunpack.i.h.bf16 %v2815_v46  ;;  %v2044_v40 = vunpack.i.l.bf16 %v2815_v46 }
  0xe3   : > { %v1277_v57 = vsel %vm1272_vm11, %v1268_v28, %v2029_v47  ;;  %v1278_v1 = vsel %vm1272_vm11, %v1269_v13, %v2030_v60 }
  0xe5   : > { %v2821_v53 = vpop.permute.xlu2 %2057 }
  0xe7   : > { %v2823_v22 = vpop.permute.xlu1 %2022 }
  0xe8   : > { %v2825_v0 = vpop.permute.xlu0 %2017  ;;  %v2025_v34 = vunpack.i.h.bf16 %v2823_v22  ;;  %v2024_v2 = vunpack.i.l.bf16 %v2823_v22  ;;  %v2060_v22 = vunpack.i.h.bf16 %v2821_v53 }
  0xed   : > { %v2073_v16 = vpop.permute.xlu2 %2072 }
  0xee   : > { %v2075_v5 = vunpack.i.h.bf16 %v2073_v16  ;;  %v2074_v49 = vunpack.i.l.bf16 %v2073_v16 }
  0xef   : > { %v2831_v63 = vpop.permute.xlu1 %2037 }
  0xf0   : > { %v2033_v51 = vpop.permute.xlu0 %2032 }
  0xf1   : > { %v2035_v33 = vunpack.i.h.bf16 %v2033_v51  ;;  %v2034_v9 = vunpack.i.l.bf16 %v2033_v51 }
  0xf3   : > { %v1291_v12 = vsel %vm1290_vm13, %v1282_v25, %v2034_v9  ;;  %v1292_v61 = vsel %vm1290_vm13, %v1283_v19, %v2035_v33  ;;  %v2005_v9 = vunpack.i.h.bf16 %v2819_v4  ;;  %v2020_v25 = vunpack.i.h.bf16 %v2825_v0 }
  0xf4   : > { %v2019_v19 = vunpack.i.l.bf16 %v2825_v0 }
  0xf5   : > { %v2088_v32 = vpop.permute.xlu2 %2087  ;;  %v1244_v46 = vsel %vm1236_vm7, %v2791_v39, %v2020_v25 }
  0xf6   : > { %v2090_v43 = vunpack.i.h.bf16 %v2088_v32  ;;  %v2089_v45 = vunpack.i.l.bf16 %v2088_v32  ;;  %v2004_v32 = vunpack.i.l.bf16 %v2819_v4 }
  0xf7   : > { %v2053_v27 = vpop.permute.xlu1 %2052 }
  0xf8   : > { %v2055_v55 = vunpack.i.h.bf16 %v2053_v27  ;;  %v2054_v26 = vunpack.i.l.bf16 %v2053_v27  ;;  %v2048_v41 = vpop.permute.xlu0 %2047  ;;  %v2039_v27 = vunpack.i.l.bf16 %v2831_v63  ;;  %v1248_v4 = vsel %vm1245_vm8, %v2776_v44, %v2004_v32 }
  0xf9   : > { %v2050_v17 = vunpack.i.h.bf16 %v2048_v41  ;;  %v2049_v24 = vunpack.i.l.bf16 %v2048_v41  ;;  %v1257_v0 = vsel %vm1254_vm9, %v1248_v4, %v2024_v2 }
  0xfa   : > { %v1300_v59 = vsel %vm1299_vm14, %v1291_v12, %v2054_v26  ;;  %v1301_v37 = vsel %vm1299_vm14, %v1292_v61, %v2055_v55  ;;  %v1249_v55 = vsel %vm1245_vm8, %v2779_v29, %v2005_v9  ;;  %v2059_v26 = vunpack.i.l.bf16 %v2821_v53 }
  0xfb   : > { %v1309_v14 = vsel %vm1308_vm15, %v1300_v59, %v2074_v49  ;;  %v1310_v16 = vsel %vm1308_vm15, %v1301_v37, %v2075_v5  ;;  %v1286_v18 = vsel %vm1281_vm12, %v1277_v57, %v2049_v24  ;;  %v1287_v20 = vsel %vm1281_vm12, %v1278_v1, %v2050_v17 }
  0xfc   : > { %v1317_v6 = vpack.c.bf16 %v1310_v16, %v1309_v14  ;;  %v2040_v49 = vunpack.i.h.bf16 %v2831_v63  ;;  %v1258_v41 = vsel %vm1254_vm9, %v1249_v55, %v2025_v34  ;;  %v1243_v63 = vsel %vm1236_vm7, %v2788_v42, %v2019_v19 }
  0xfd   : > { %v2103_v36 = vpop.permute.xlu2 %2102  ;;  %v1252_v56 = vsel %vm1245_vm8, %v1243_v63, %v2039_v27  ;;  %v1266_v47 = vsel %vm1263_vm10, %v1257_v0, %v2044_v40  ;;  %v1267_v59 = vsel %vm1263_vm10, %v1258_v41, %v2045_v31 }
  0xfe   : > { %1750 = vmatmul.msk.bf16.vlgmr.msra.gmra.mxu0 %vm1353_vm0, %v1317_v6  ;;  %v2105_v50 = vunpack.i.h.bf16 %v2103_v36  ;;  %v2104_v48 = vunpack.i.l.bf16 %v2103_v36  ;;  %v1253_v44 = vsel %vm1245_vm8, %v1244_v46, %v2040_v49  ;;  %v1261_v42 = vsel %vm1254_vm9, %v1252_v56, %v2059_v26 }
  0xff   : > { %v2068_v30 = vpop.permute.xlu1 %2067  ;;  %v1262_v39 = vsel %vm1254_vm9, %v1253_v44, %v2060_v22 }
 0x100   : > { %v2070_v51 = vunpack.i.h.bf16 %v2068_v30  ;;  %v2069_v38 = vunpack.i.l.bf16 %v2068_v30  ;;  %v2063_v54 = vpop.permute.xlu0 %2062 }
 0x101   : > { %v2065_v60 = vunpack.i.h.bf16 %v2063_v54  ;;  %v2064_v29 = vunpack.i.l.bf16 %v2063_v54 }
 0x102   : > { %v1295_v52 = vsel %vm1290_vm13, %v1286_v18, %v2069_v38  ;;  %v1296_v3 = vsel %vm1290_vm13, %v1287_v20, %v2070_v51 }
 0x103   : > { %v1304_v7 = vsel %vm1299_vm14, %v1295_v52, %v2089_v45  ;;  %v1305_v15 = vsel %vm1299_vm14, %v1296_v3, %v2090_v43  ;;  %v1275_v28 = vsel %vm1272_vm11, %v1266_v47, %v2064_v29  ;;  %v1276_v13 = vsel %vm1272_vm11, %v1267_v59, %v2065_v60 }
 0x104   : > { %v1313_v35 = vsel %vm1308_vm15, %v1304_v7, %v2104_v48  ;;  %v1314_v8 = vsel %vm1308_vm15, %v1305_v15, %v2105_v50 }
 0x105   : > { %v1319_v10 = vpack.c.bf16 %v1314_v8, %v1313_v35  ;;  %v2118_v5 = vpop.permute.xlu2 %2117 }
 0x106   : > { %v2120_v51 = vunpack.i.h.bf16 %v2118_v5  ;;  %v2119_v38 = vunpack.i.l.bf16 %v2118_v5 }
 0x107   : > { %v2083_v11 = vpop.permute.xlu1 %2082  ;;  %1752 = vmatmul.msk.bf16.vlgmr.msra.gmra.mxu2 %vm1353_vm0, %v1319_v10 }
 0x108   : > { %v2078_v21 = vpop.permute.xlu0 %2077  ;;  %v2085_v6 = vunpack.i.h.bf16 %v2083_v11  ;;  %v2084_v17 = vunpack.i.l.bf16 %v2083_v11 }
 0x109   : > { %v2080_v61 = vunpack.i.h.bf16 %v2078_v21  ;;  %v2079_v62 = vunpack.i.l.bf16 %v2078_v21 }
 0x10a   : > { %v1284_v20 = vsel %vm1281_vm12, %v1275_v28, %v2084_v17  ;;  %v1285_v52 = vsel %vm1281_vm12, %v1276_v13, %v2085_v6 }
 0x10b   : > { %v1270_v24 = vsel %vm1263_vm10, %v1261_v42, %v2079_v62  ;;  %v1271_v36 = vsel %vm1263_vm10, %v1262_v39, %v2080_v61 }
 0x10d   : > { %v2133_v43 = vpop.permute.xlu2 %2132 }
 0x10e   : > { %v2135_v7 = vunpack.i.h.bf16 %v2133_v43  ;;  %v2134_v15 = vunpack.i.l.bf16 %v2133_v43 }
 0x10f   : > { %v2098_v58 = vpop.permute.xlu1 %2097 }
 0x110   : > { %v2093_v33 = vpop.permute.xlu0 %2092  ;;  %v2100_v57 = vunpack.i.h.bf16 %v2098_v58  ;;  %v2099_v1 = vunpack.i.l.bf16 %v2098_v58 }
 0x111   : > { %v2095_v37 = vunpack.i.h.bf16 %v2093_v33  ;;  %v2094_v23 = vunpack.i.l.bf16 %v2093_v33 }
 0x112   : > { %v1293_v35 = vsel %vm1290_vm13, %v1284_v20, %v2099_v1  ;;  %v1294_v8 = vsel %vm1290_vm13, %v1285_v52, %v2100_v57 }
 0x113   : > { %v1279_v45 = vsel %vm1272_vm11, %v1270_v24, %v2094_v23  ;;  %v1280_v30 = vsel %vm1272_vm11, %v1271_v36, %v2095_v37 }
 0x117   : > { %v2113_v12 = vpop.permute.xlu1 %2112 }
 0x118   : > { %v2108_v53 = vpop.permute.xlu0 %2107  ;;  %v2115_v54 = vunpack.i.h.bf16 %v2113_v12  ;;  %v2114_v50 = vunpack.i.l.bf16 %v2113_v12 }
 0x119   : > { %v2110_v14 = vunpack.i.h.bf16 %v2108_v53  ;;  %v2109_v16 = vunpack.i.l.bf16 %v2108_v53 }
 0x11a   : > { %v1302_v34 = vsel %vm1299_vm14, %v1293_v35, %v2114_v50  ;;  %v1303_v2 = vsel %vm1299_vm14, %v1294_v8, %v2115_v54 }
 0x11b   : > { %v1288_v48 = vsel %vm1281_vm12, %v1279_v45, %v2109_v16  ;;  %v1289_v18 = vsel %vm1281_vm12, %v1280_v30, %v2110_v14 }
 0x11c   : > { %v1297_v58 = vsel %vm1290_vm13, %v1288_v48, %v2119_v38  ;;  %v1298_v33 = vsel %vm1290_vm13, %v1289_v18, %v2120_v51 }
 0x11f   : > { %v2128_v3 = vpop.permute.xlu1 %2127 }
 0x120   : > { %v2130_v10 = vunpack.i.h.bf16 %v2128_v3  ;;  %v2129_v11 = vunpack.i.l.bf16 %v2128_v3  ;;  %v2123_v21 = vpop.permute.xlu0 %2122 }
 0x121   : > { %v2125_v9 = vunpack.i.h.bf16 %v2123_v21  ;;  %v2124_v32 = vunpack.i.l.bf16 %v2123_v21 }
 0x122   : > { %v1306_v25 = vsel %vm1299_vm14, %v1297_v58, %v2129_v11  ;;  %v1307_v19 = vsel %vm1299_vm14, %v1298_v33, %v2130_v10 }
 0x123   : > { %v1311_v5 = vsel %vm1308_vm15, %v1302_v34, %v2124_v32  ;;  %v1312_v49 = vsel %vm1308_vm15, %v1303_v2, %v2125_v9  ;;  %v1315_v27 = vsel %vm1308_vm15, %v1306_v25, %v2134_v15  ;;  %v1316_v31 = vsel %vm1308_vm15, %v1307_v19, %v2135_v7 }
 0x124   : > { %v1318_v40 = vpack.c.bf16 %v1312_v49, %v1311_v5  ;;  %v1320_v4 = vpack.c.bf16 %v1316_v31, %v1315_v27 }
 0x126   : > { %1751 = vmatmul.msk.bf16.vlgmr.msra.gmra.mxu1 %vm1353_vm0, %v1318_v40  ;;  %1753 = vmatmul.msk.bf16.vlgmr.msra.gmra.mxu3 %vm1353_vm0, %v1320_v4 }
 0x17b   : > { %v1375_v55 = vpop.f32.mrf.mxu0 }
 0x183   : > { %v1377_v22 = vpop.f32.mrf.mxu0 }
 0x184   : > { %v1764_v26 = vpack.c.bf16 %v1377_v22, %v1375_v55  ;;  %v1395_v56 = vadd.f32 %v1377_v22, %v1375_v55 }
 0x186   : > { %1765 = vst [vmem:[%s209_s24] sm:$0xff] %v1764_v26  }
 0x18a   : > { %v1385_v0 = vpop.f32.mrf.mxu2 }
 0x192   : > { %v1387_v41 = vpop.f32.mrf.mxu2 }
 0x193   : > { %v1774_v63 = vpack.c.bf16 %v1387_v41, %v1385_v0 }
 0x195   : > { %1782 = vst [vmem:[%s209_s24 + $0x10] sm:$0xff] %v1774_v63  }
 0x1a3   : > { %v1380_v46 = vpop.f32.mrf.mxu1 }
 0x1a4   : > { %v1396_v60 = vadd.f32 %v1395_v56, %v1380_v46 }
 0x1a9   : > { %v1390_v44 = vpop.f32.mrf.mxu3 }
 0x1ab   : > { %v1382_v29 = vpop.f32.mrf.mxu1 }
 0x1ac   : > { %v1397_v12 = vadd.f32 %v1396_v60, %v1382_v29  ;;  %v1769_v61 = vpack.c.bf16 %v1382_v29, %v1380_v46 }
 0x1ae   : > { %v1398_v62 = vadd.f32 %v1397_v12, %v1385_v0  ;;  %1781 = vst [vmem:[%s209_s24 + $0x8] sm:$0xff] %v1769_v61  }
 0x1b0   : > { %v1399_v53 = vadd.f32 %v1398_v62, %v1387_v41 }
 0x1b1   : > { %v1392_v47 = vpop.f32.mrf.mxu3 }
 0x1b2   : > { %v1400_v59 = vadd.f32 %v1399_v53, %v1390_v44  ;;  %v1779_v37 = vpack.c.bf16 %v1392_v47, %v1390_v44 }
 0x1b4   : > { %v1401_v23 = vadd.f32 %v1400_v59, %v1392_v47  ;;  %1783 = vst [vmem:[%s209_s24 + $0x18] sm:$0xff] %v1779_v37  }
 0x1b6   : > { %v1402_v42 = vrot.slane %v1401_v23, 4 }
 0x1b8   : > { %v1403_v39 = vadd.f32 %v1402_v42, %v1401_v23 }
 0x1ba   : > { %v1404_v14 = vrot.slane %v1403_v39, 2 }
 0x1bc   : > { %v1405_v16 = vadd.f32 %v1404_v14, %v1403_v39 }
 0x1be   : > { %v1406_v28 = vrot.slane %v1405_v16, 1 }
 0x1c0   : > { %v1407_v13 = vadd.f32 %v1406_v28, %v1405_v16 }
 0x1c2   : > { %v1408_v6 = vmul.f32 0.015625, %v1407_v13 }
 0x1c4   : > { %v1409_v17 = vsub.f32 %v1375_v55, %v1408_v6  ;;  %v1410_v24 = vsub.f32 %v1377_v22, %v1408_v6  ;;  %v1411_v36 = vsub.f32 %v1380_v46, %v1408_v6  ;;  %v1412_v57 = vsub.f32 %v1382_v29, %v1408_v6 }
 0x1c5   : > { %v1413_v45 = vsub.f32 %v1385_v0, %v1408_v6  ;;  %v1414_v38 = vsub.f32 %v1387_v41, %v1408_v6  ;;  %v1415_v48 = vsub.f32 %v1390_v44, %v1408_v6  ;;  %v1416_v52 = vsub.f32 %v1392_v47, %v1408_v6 }
 0x1c6   : > { %v1417_v1 = vmul.f32 %v1409_v17, %v1409_v17  ;;  %v1418_v43 = vmul.f32 %v1410_v24, %v1410_v24  ;;  %v1419_v30 = vmul.f32 %v1411_v36, %v1411_v36  ;;  %v1420_v54 = vmul.f32 %v1412_v57, %v1412_v57 }
 0x1c7   : > { %v1421_v18 = vmul.f32 %v1413_v45, %v1413_v45  ;;  %v1422_v3 = vmul.f32 %v1414_v38, %v1414_v38  ;;  %v1423_v15 = vmul.f32 %v1415_v48, %v1415_v48  ;;  %v1424_v8 = vmul.f32 %v1416_v52, %v1416_v52 }
 0x1c8   : > { %v1425_v51 = vadd.f32 %v1418_v43, %v1417_v1 }
 0x1ca   : > { %v1426_v50 = vadd.f32 %v1425_v51, %v1419_v30 }
 0x1cc   : > { %v1427_v20 = vadd.f32 %v1426_v50, %v1420_v54 }
 0x1ce   : > { %v1428_v7 = vadd.f32 %v1427_v20, %v1421_v18 }
 0x1d0   : > { %v1429_v35 = vadd.f32 %v1428_v7, %v1422_v3 }
 0x1d2   : > { %v1430_v10 = vadd.f32 %v1429_v35, %v1423_v15 }
 0x1d4   : > { %v1431_v11 = vadd.f32 %v1430_v10, %v1424_v8 }
 0x1d6   : > { %v1432_v21 = vrot.slane %v1431_v11, 4 }
 0x1d8   : > { %v1433_v58 = vadd.f32 %v1432_v21, %v1431_v11 }
 0x1da   : > { %v1434_v33 = vrot.slane %v1433_v58, 2 }
 0x1dc   : > { %v1435_v9 = vadd.f32 %v1434_v33, %v1433_v58 }
 0x1de   : > { %v1436_v32 = vrot.slane %v1435_v9, 1 }
 0x1e0   : > { %v1437_v34 = vadd.f32 %v1436_v32, %v1435_v9 }
 0x1e2   : > { %v1455_v2 = vsel %vm1454_vm1, %v1407_v13, %v1437_v34 }
 0x1e3   : > { %1456 = vst [vmem:[%s217_s28] sm:$0x3] %v1455_v2 }
 0x1e4 PF: > { %s14_s14 = sadd.s32 1, %s2158_s14   ;;  %s2963_s12 = smov %s2154_s13 }
 0x1e5   : > { %p11_p6 = scmp.ge.s32.totalorder %s14_s14, 4   ;;  %s2964_s13 = smov %s2966_s15 }
 0x1e7   :  { %13 = sbr.rel (!%p11_p6) target bundleno = 2 (0x2), region = 78 }

</bundles_post_ra>
